<compile_context>
chip_gen: v5e
topology: v5e:2x2
jax: 0.10.0
libtpu: 0.0.40
codegen_flags: <defaults>
</compile_context>

<pallas_src>
import functools

import jax
import jax.numpy as jnp
import numpy as np
from jax import lax
from jax.experimental import pallas as pl
from jax.experimental.pallas import tpu as pltpu

EPS = 1e-5  # BatchNorm2d default eps

# Tap offsets for a 3x3, padding=1, stride=1 conv: t = (oi+1)*3 + (oj+1).
_TAP_OFFSETS = tuple((oi, oj) for oi in (-1, 0, 1) for oj in (-1, 0, 1))


# ----------------------------- in-kernel helpers -----------------------------

def _bn_relu_rows(y, g, b):
    # y: [C, Npix] f32, channels on rows (sublanes), pixels on lanes.
    # Single-pass train-mode BatchNorm (biased variance) + ReLU, folded affine.
    npix = y.shape[1]
    s1 = jnp.sum(y, axis=1, keepdims=True)            # [C, 1]
    s2 = jnp.sum(y * y, axis=1, keepdims=True)        # [C, 1]
    mean = s1 / npix
    var = s2 / npix - mean * mean
    scale = g * lax.rsqrt(var + EPS)                  # [C, 1]
    shift = b - mean * scale
    return jnp.maximum(y * scale + shift, 0.0)


# ----------------------------- Pallas kernels -----------------------------

def deconv_subpixel_bn_relu_kernel(x_ref, w_ref, g_ref, b_ref, o_ref, *, kk, co):
    # Sub-pixel ConvTranspose2d (stride == kernel, padding == 0) + train-BN + ReLU.
    #   x: [Cin, N1]      (pixels on lanes)
    #   w: [kk*Co, Cin]   rows ordered (tap, co)
    #   g/b: [Co, 1]
    #   o: [kk*Co, N1]    rows ordered (tap, co)
    y = jnp.dot(w_ref[...], x_ref[...], preferred_element_type=jnp.float32)
    n1 = y.shape[1]

    # Single-pass BN stats per channel: reduce lanes, then combine the kk tap rows.
    r1 = jnp.sum(y, axis=1, keepdims=True)            # [kk*Co, 1]
    r2 = jnp.sum(y * y, axis=1, keepdims=True)        # [kk*Co, 1]
    s1 = r1[0:co]
    s2 = r2[0:co]
    for t in range(1, kk):
        s1 = s1 + r1[t * co:(t + 1) * co]
        s2 = s2 + r2[t * co:(t + 1) * co]
    cnt = kk * n1
    mean = s1 / cnt
    var = s2 / cnt - mean * mean
    scale = g_ref[...] * lax.rsqrt(var + EPS)         # [Co, 1]
    shift = b_ref[...] - mean * scale
    scale_r = jnp.concatenate([scale] * kk, axis=0)   # [kk*Co, 1]
    shift_r = jnp.concatenate([shift] * kk, axis=0)
    o_ref[...] = jnp.maximum(y * scale_r + shift_r, 0.0)


def _conv3x3_bn_relu_kernel(*refs, n_in, img_w):
    # Fused Conv2d(3x3, stride=1, padding=1) + train-BN + ReLU, channel-concat of the
    # n_in inputs folded into the weight columns.  Padding is realized by masking
    # boundary taps, so inputs are UNPADDED.
    #   refs = (x_0 .. x_{n_in-1}, masks, w, gamma, beta, out)
    #   x_i   : [C_i, Npix]          channels-major, pixels (b,i,j)-flattened on lanes
    #   masks : [9, Npix]            0/1 validity of each tap at each output pixel
    #   w     : [Co, 9*sum(C_i)]     columns ordered (input, tap, ci)
    #   out   : [Co, Npix]
    xs = refs[:n_in]
    m_ref, w_ref, g_ref, b_ref, o_ref = refs[n_in:]
    npix = o_ref.shape[1]
    masks = m_ref[...]                                # [9, Npix]

    pieces = []
    for x_ref in xs:
        x = x_ref[...]                                # [C_i, Npix]
        for t, (oi, oj) in enumerate(_TAP_OFFSETS):
            delta = oi * img_w + oj                   # flat-index offset of the source pixel
            shift = (-delta) % npix
            shifted = pltpu.roll(x, shift, axis=1) if shift else x
            if oi == 0 and oj == 0:
                pieces.append(shifted)                # center tap: always valid
            else:
                pieces.append(shifted * masks[t:t + 1, :])
    patches = jnp.concatenate(pieces, axis=0)         # [9*sum(C_i), Npix]

    y = jnp.dot(w_ref[...], patches, preferred_element_type=jnp.float32)   # [Co, Npix]
    o_ref[...] = _bn_relu_rows(y, g_ref[...], b_ref[...])


def gemm_bn_relu_kernel(w_ref, p_ref, g_ref, b_ref, o_ref):
    # Generic fused GEMM + BN + ReLU (fallback path for general deconv configs).
    #   w: [Co, K], p: [K, Npix], o: [Co, Npix]
    y = jnp.dot(w_ref[...], p_ref[...], preferred_element_type=jnp.float32)
    o_ref[...] = _bn_relu_rows(y, g_ref[...], b_ref[...])


# ----------------------------- pallas_call wrappers -----------------------------

def _vspec():
    return pl.BlockSpec(memory_space=pltpu.MemorySpace.VMEM)


def deconv_subpixel_bn_relu(x_t, w_all, gamma, beta, kk, co):
    _, n1 = x_t.shape
    kernel = functools.partial(deconv_subpixel_bn_relu_kernel, kk=kk, co=co)
    return pl.pallas_call(
        kernel,
        out_shape=jax.ShapeDtypeStruct((kk * co, n1), jnp.float32),
        in_specs=[_vspec() for _ in range(4)],
        out_specs=_vspec(),
    )(x_t, w_all, gamma.reshape(co, 1), beta.reshape(co, 1))


def conv3x3_bn_relu(inputs_t, w_t, gamma, beta, masks, img_w):
    n_in = len(inputs_t)
    co = w_t.shape[0]
    npix = inputs_t[0].shape[1]
    kernel = functools.partial(_conv3x3_bn_relu_kernel, n_in=n_in, img_w=img_w)
    return pl.pallas_call(
        kernel,
        out_shape=jax.ShapeDtypeStruct((co, npix), jnp.float32),
        in_specs=[_vspec() for _ in range(n_in + 4)],
        out_specs=_vspec(),
    )(*inputs_t, masks, w_t, gamma.reshape(co, 1), beta.reshape(co, 1))


def gemm_bn_relu(w_t, p_t, gamma, beta):
    co = w_t.shape[0]
    n = p_t.shape[1]
    return pl.pallas_call(
        gemm_bn_relu_kernel,
        out_shape=jax.ShapeDtypeStruct((co, n), jnp.float32),
        in_specs=[_vspec() for _ in range(4)],
        out_specs=_vspec(),
    )(w_t, p_t, gamma.reshape(co, 1), beta.reshape(co, 1))


# ------------------------------- JAX glue ----------------------------------

def _make_tap_masks(B, H, W):
    # Static 0/1 validity of each 3x3 tap at each (b, i, j) pixel (built at trace time).
    n = np.arange(B * H * W)
    i = (n // W) % H
    j = n % W
    rows = []
    for oi, oj in _TAP_OFFSETS:
        ok = (i + oi >= 0) & (i + oi < H) & (j + oj >= 0) & (j + oj < W)
        rows.append(ok.astype(np.float32))
    return jnp.asarray(np.stack(rows, axis=0))        # [9, B*H*W]


def _dilate2d(x_nhwc, s):
    # Insert (s-1) zeros between spatial elements (general transposed-conv fallback).
    if s == 1:
        return x_nhwc
    B, H, W, C = x_nhwc.shape
    y = jnp.zeros((B, H, s, W, s, C), x_nhwc.dtype)
    y = y.at[:, :, 0, :, 0, :].set(x_nhwc)
    y = y.reshape(B, H * s, W * s, C)
    return y[:, : (H - 1) * s + 1, : (W - 1) * s + 1, :]


def _im2col(x_padded_nhwc, kh, kw):
    # stride-1 sliding window -> [B*Ho*Wo, kh*kw*C]   (general fallback only)
    B, Hp, Wp, C = x_padded_nhwc.shape
    Ho, Wo = Hp - kh + 1, Wp - kw + 1
    cols = [x_padded_nhwc[:, di:di + Ho, dj:dj + Wo, :]
            for di in range(kh) for dj in range(kw)]
    patches = jnp.stack(cols, axis=3)                 # [B, Ho, Wo, kh*kw, C]
    return patches.reshape(B * Ho * Wo, kh * kw * C), Ho, Wo


def prepare_params(raw, ksize, stride, padding):
    """One-time weight re-layout into the lane-dense (transposed) orientation."""
    Cin, Co = raw["Wd"].shape[0], raw["Wd"].shape[1]
    p = {}
    if stride == ksize and padding == 0:
        # sub-pixel deconv: rows (tap, co), cols ci; value = Wd[ci, co, di, dj]
        p["Wd_sub_t"] = raw["Wd"].transpose(2, 3, 1, 0).reshape(ksize * ksize * Co, Cin)
    else:
        # general fallback: flipped kernel, [Co, (a, b, ci)]
        p["Wd_flip_t"] = (raw["Wd"][:, :, ::-1, ::-1]
                          .transpose(1, 2, 3, 0)
                          .reshape(Co, ksize * ksize * Cin))
    # conv2 weight: concat halves folded into columns, ordered (input, tap, ci);
    # first half sees the deconv output, second half sees the skip connection.
    w2a = raw["W2"][:, :Co].transpose(0, 2, 3, 1).reshape(Co, 9 * Co)
    w2b = raw["W2"][:, Co:].transpose(0, 2, 3, 1).reshape(Co, 9 * Co)
    p["W2_t"] = jnp.concatenate([w2a, w2b], axis=1)   # [Co, 18*Co]
    p["W3_t"] = raw["W3"].transpose(0, 2, 3, 1).reshape(Co, 9 * Co)
    for k in ("g1", "be1", "g2", "be2", "g3", "be3"):
        p[k] = raw[k]
    # Conv biases intentionally dropped: train-mode BN mean-subtraction cancels them
    # exactly (would NOT hold for eval-mode BN with running statistics).
    return p


def decoder_block_forward(p, x_nchw, skip_nchw, ksize, stride, padding):
    B, Cin, H, W = x_nchw.shape
    Co = p["W3_t"].shape[0]

    # ---- convBlockup1: ConvTranspose2d + BN + ReLU (fused, lane-dense) ----
    if "Wd_sub_t" in p:
        kk = ksize * ksize
        x_t = jnp.transpose(x_nchw, (1, 0, 2, 3)).reshape(Cin, B * H * W)
        y_all = deconv_subpixel_bn_relu(x_t, p["Wd_sub_t"], p["g1"], p["be1"], kk, Co)
        H2, W2 = H * ksize, W * ksize
        # depth-to-space glue (tiny): rows (tap, co) -> channels-major (b, i2, j2) pixels
        y_t = (y_all.reshape(ksize, ksize, Co, B, H, W)
                    .transpose(2, 3, 4, 0, 5, 1)
                    .reshape(Co, B * H2 * W2))
    else:
        # General (k, s, p) fallback: zero-insert + pad + im2col in XLA, fused GEMM/BN/ReLU.
        x_nhwc = jnp.transpose(x_nchw, (0, 2, 3, 1))
        xd = _dilate2d(x_nhwc, stride)
        pad = ksize - 1 - padding
        xp = jnp.pad(xd, ((0, 0), (pad, pad), (pad, pad), (0, 0)))
        cols, H2, W2 = _im2col(xp, ksize, ksize)      # [B*H2*W2, kk*Cin]
        y_t = gemm_bn_relu(p["Wd_flip_t"], cols.T, p["g1"], p["be1"])   # [Co, B*H2*W2]

    npix = B * H2 * W2
    masks = _make_tap_masks(B, H2, W2)                # [9, npix] static 0/1 constants

    # ---- convBlock2: Conv2d(2*Co, Co, 3, 1, 1) + BN + ReLU ----
    # Concat with skip fused into the kernel via the weight column split; no padding
    # in HBM — boundary taps are masked in-kernel.
    skip_t = jnp.transpose(skip_nchw, (1, 0, 2, 3)).reshape(Co, npix)
    z2_t = conv3x3_bn_relu([y_t, skip_t], p["W2_t"], p["g2"], p["be2"], masks, W2)

    # ---- convBlock3: Conv2d(Co, Co, 3, 1, 1) + BN + ReLU ----
    z3_t = conv3x3_bn_relu([z2_t], p["W3_t"], p["g3"], p["be3"], masks, W2)

    return jnp.transpose(z3_t.reshape(Co, B, H2, W2), (1, 0, 2, 3))      # back to NCHW


# --------------------- pure-JAX reference (for checking) -------------------

def reference_forward(raw, x_nchw, skip_nchw, ksize, stride, padding):
    def bn_relu_ref(y, g, b):
        mean = jnp.mean(y, axis=(0, 2, 3), keepdims=True)
        var = jnp.mean((y - mean) ** 2, axis=(0, 2, 3), keepdims=True)
        yhat = (y - mean) * lax.rsqrt(var + EPS)
        return jnp.maximum(yhat * g.reshape(1, -1, 1, 1) + b.reshape(1, -1, 1, 1), 0.0)

    pad = ksize - 1 - padding
    w_flip = raw["Wd"][:, :, ::-1, ::-1].transpose(1, 0, 2, 3)   # [Co, Cin, kh, kw]
    y = lax.conv_general_dilated(
        x_nchw, w_flip, window_strides=(1, 1), padding=((pad, pad), (pad, pad)),
        lhs_dilation=(stride, stride), dimension_numbers=("NCHW", "OIHW", "NCHW"))
    y = bn_relu_ref(y + raw["bd"].reshape(1, -1, 1, 1), raw["g1"], raw["be1"])
    z = jnp.concatenate([y, skip_nchw], axis=1)
    z = lax.conv_general_dilated(z, raw["W2"], (1, 1), ((1, 1), (1, 1)),
                                 dimension_numbers=("NCHW", "OIHW", "NCHW"))
    z = bn_relu_ref(z + raw["b2"].reshape(1, -1, 1, 1), raw["g2"], raw["be2"])
    z = lax.conv_general_dilated(z, raw["W3"], (1, 1), ((1, 1), (1, 1)),
                                 dimension_numbers=("NCHW", "OIHW", "NCHW"))
    z = bn_relu_ref(z + raw["b3"].reshape(1, -1, 1, 1), raw["g3"], raw["be3"])
    return z


# --------------------------------- main -------------------------------------

if __name__ == "__main__":
    # DecoderBlock(in_channels=8, out_channels=4, kernel_size=2, stride=2, padding=0)
    Cin, Co, K, S, P = 8, 4, 2, 2, 0
    B, H, W = 2, 8, 8                       # x: [2, 8, 8, 8]; skip: [2, 4, 16, 16]

    key = jax.random.PRNGKey(0)
    ks = jax.random.split(key, 8)
    raw_params = {
        # ConvTranspose2d weight: [in, out, kh, kw]
        "Wd": jax.random.normal(ks[0], (Cin, Co, K, K), jnp.float32) * 0.1,
        "bd": jax.random.normal(ks[1], (Co,), jnp.float32) * 0.1,
        "g1": jnp.ones((Co,), jnp.float32), "be1": jnp.zeros((Co,), jnp.float32),
        # Conv2d weights: [out, in, kh, kw]
        "W2": jax.random.normal(ks[2], (Co, 2 * Co, 3, 3), jnp.float32) * 0.1,
        "b2": jax.random.normal(ks[3], (Co,), jnp.float32) * 0.1,
        "g2": jnp.ones((Co,), jnp.float32), "be2": jnp.zeros((Co,), jnp.float32),
        "W3": jax.random.normal(ks[4], (Co, Co, 3, 3), jnp.float32) * 0.1,
        "b3": jax.random.normal(ks[5], (Co,), jnp.float32) * 0.1,
        "g3": jnp.ones((Co,), jnp.float32), "be3": jnp.zeros((Co,), jnp.float32),
    }
    x = jax.random.normal(ks[6], (B, Cin, H, W), jnp.float32)
    skip = jax.random.normal(ks[7], (B, Co, H * S, W * S), jnp.float32)

    params = prepare_params(raw_params, K, S, P)      # one-time weight re-layout
    fwd = jax.jit(decoder_block_forward, static_argnums=(3, 4, 5))

    out = fwd(params, x, skip, K, S, P)
    out = jax.block_until_ready(out)
    assert out.shape == (B, Co, H * S, W * S)

    ref = reference_forward(raw_params, x, skip, K, S, P)
    np.testing.assert_allclose(np.asarray(out), np.asarray(ref), rtol=2e-3, atol=2e-3)

    print("KERNEL_OK")
</pallas_src>

<mosaic_0001>
module attributes {stable_mosaic.version = 11 : i64} {
  func.func @deconv_subpixel_bn_relu_kernel(%arg0: memref<8x128xf32, #tpu.memory_space<vmem>>, %arg1: memref<16x8xf32, #tpu.memory_space<vmem>>, %arg2: memref<4x1xf32, #tpu.memory_space<vmem>>, %arg3: memref<4x1xf32, #tpu.memory_space<vmem>>, %arg4: memref<16x128xf32, #tpu.memory_space<vmem>>) attributes {dimension_semantics = [], scalar_prefetch = 0 : i64, scratch_operands = 0 : i64, tpu.core_type = #tpu.core_type<tc>} {
    %c0 = arith.constant 0 : index
    %c0_0 = arith.constant 0 : index
    %0 = vector.load %arg1[%c0, %c0_0] : memref<16x8xf32, #tpu.memory_space<vmem>>, vector<16x8xf32>
    %c0_1 = arith.constant 0 : index
    %c0_2 = arith.constant 0 : index
    %1 = vector.load %arg0[%c0_1, %c0_2] : memref<8x128xf32, #tpu.memory_space<vmem>>, vector<8x128xf32>
    %cst = arith.constant dense<0.000000e+00> : vector<16x128xf32>
    %2 = tpu.matmul %0, %1, %cst {dimension_numbers = #tpu.dot_dimension_numbers<[1], [0], [0], [1], [0, 0, 1, 1], [], []>} : vector<16x8xf32>, vector<8x128xf32>, vector<16x128xf32> -> vector<16x128xf32>
    %cst_3 = arith.constant dense<0.000000e+00> : vector<16xf32>
    %3 = vector.multi_reduction <add>, %2, %cst_3 [1] : vector<16x128xf32> to vector<16xf32>
    %4 = vector.shape_cast %3 : vector<16xf32> to vector<16x1xf32>
    %5 = arith.mulf %2, %2 : vector<16x128xf32>
    %cst_4 = arith.constant dense<0.000000e+00> : vector<16xf32>
    %6 = vector.multi_reduction <add>, %5, %cst_4 [1] : vector<16x128xf32> to vector<16xf32>
    %7 = vector.shape_cast %6 : vector<16xf32> to vector<16x1xf32>
    %8 = vector.extract_strided_slice %4 {offsets = [0, 0], sizes = [4, 1], strides = [1, 1]} : vector<16x1xf32> to vector<4x1xf32>
    %9 = vector.extract_strided_slice %7 {offsets = [0, 0], sizes = [4, 1], strides = [1, 1]} : vector<16x1xf32> to vector<4x1xf32>
    %10 = vector.extract_strided_slice %4 {offsets = [4, 0], sizes = [4, 1], strides = [1, 1]} : vector<16x1xf32> to vector<4x1xf32>
    %11 = arith.addf %8, %10 : vector<4x1xf32>
    %12 = vector.extract_strided_slice %7 {offsets = [4, 0], sizes = [4, 1], strides = [1, 1]} : vector<16x1xf32> to vector<4x1xf32>
    %13 = arith.addf %9, %12 : vector<4x1xf32>
    %14 = vector.extract_strided_slice %4 {offsets = [8, 0], sizes = [4, 1], strides = [1, 1]} : vector<16x1xf32> to vector<4x1xf32>
    %15 = arith.addf %11, %14 : vector<4x1xf32>
    %16 = vector.extract_strided_slice %7 {offsets = [8, 0], sizes = [4, 1], strides = [1, 1]} : vector<16x1xf32> to vector<4x1xf32>
    %17 = arith.addf %13, %16 : vector<4x1xf32>
    %18 = vector.extract_strided_slice %4 {offsets = [12, 0], sizes = [4, 1], strides = [1, 1]} : vector<16x1xf32> to vector<4x1xf32>
    %19 = arith.addf %15, %18 : vector<4x1xf32>
    %20 = vector.extract_strided_slice %7 {offsets = [12, 0], sizes = [4, 1], strides = [1, 1]} : vector<16x1xf32> to vector<4x1xf32>
    %21 = arith.addf %17, %20 : vector<4x1xf32>
    %cst_5 = arith.constant 5.120000e+02 : f32
    %22 = vector.broadcast %cst_5 : f32 to vector<4x1xf32>
    %23 = arith.divf %19, %22 : vector<4x1xf32>
    %cst_6 = arith.constant 5.120000e+02 : f32
    %24 = vector.broadcast %cst_6 : f32 to vector<4x1xf32>
    %25 = arith.divf %21, %24 : vector<4x1xf32>
    %26 = arith.mulf %23, %23 : vector<4x1xf32>
    %27 = arith.subf %25, %26 : vector<4x1xf32>
    %c0_7 = arith.constant 0 : index
    %c0_8 = arith.constant 0 : index
    %28 = vector.load %arg2[%c0_7, %c0_8] : memref<4x1xf32, #tpu.memory_space<vmem>>, vector<4x1xf32>
    %cst_9 = arith.constant 9.99999974E-6 : f32
    %29 = vector.broadcast %cst_9 : f32 to vector<4x1xf32>
    %30 = arith.addf %27, %29 : vector<4x1xf32>
    %31 = math.rsqrt %30 : vector<4x1xf32>
    %32 = arith.mulf %28, %31 : vector<4x1xf32>
    %c0_10 = arith.constant 0 : index
    %c0_11 = arith.constant 0 : index
    %33 = vector.load %arg3[%c0_10, %c0_11] : memref<4x1xf32, #tpu.memory_space<vmem>>, vector<4x1xf32>
    %34 = arith.mulf %23, %32 : vector<4x1xf32>
    %35 = arith.subf %33, %34 : vector<4x1xf32>
    %36 = tpu.concatenate %32, %32, %32, %32 in 0 : vector<4x1xf32>, vector<4x1xf32>, vector<4x1xf32>, vector<4x1xf32> -> vector<16x1xf32>
    %37 = tpu.concatenate %35, %35, %35, %35 in 0 : vector<4x1xf32>, vector<4x1xf32>, vector<4x1xf32>, vector<4x1xf32> -> vector<16x1xf32>
    %38 = vector.broadcast %36 : vector<16x1xf32> to vector<16x128xf32>
    %39 = arith.mulf %2, %38 : vector<16x128xf32>
    %40 = vector.broadcast %37 : vector<16x1xf32> to vector<16x128xf32>
    %41 = arith.addf %39, %40 : vector<16x128xf32>
    %cst_12 = arith.constant 0.000000e+00 : f32
    %42 = vector.broadcast %cst_12 : f32 to vector<16x128xf32>
    %43 = arith.maximumf %41, %42 : vector<16x128xf32>
    %c0_13 = arith.constant 0 : index
    %c0_14 = arith.constant 0 : index
    %44 = vector.load %arg4[%c0_13, %c0_14] : memref<16x128xf32, #tpu.memory_space<vmem>>, vector<16x128xf32>
    tpu.vector_store %arg4[%c0_13, %c0_14], %43 {strides = array<i32>} : memref<16x128xf32, #tpu.memory_space<vmem>>, vector<16x128xf32>,
    return
  }
}

module attributes {stable_mosaic.version = 11 : i64} {
  func.func @_conv3x3_bn_relu_kernel(%arg0: memref<4x512xf32, #tpu.memory_space<vmem>>, %arg1: memref<4x512xf32, #tpu.memory_space<vmem>>, %arg2: memref<9x512xf32, #tpu.memory_space<vmem>>, %arg3: memref<4x72xf32, #tpu.memory_space<vmem>>, %arg4: memref<4x1xf32, #tpu.memory_space<vmem>>, %arg5: memref<4x1xf32, #tpu.memory_space<vmem>>, %arg6: memref<4x512xf32, #tpu.memory_space<vmem>>) attributes {dimension_semantics = [], scalar_prefetch = 0 : i64, scratch_operands = 0 : i64, tpu.core_type = #tpu.core_type<tc>} {
    %c0 = arith.constant 0 : index
    %c0_0 = arith.constant 0 : index
    %0 = vector.load %arg2[%c0, %c0_0] : memref<9x512xf32, #tpu.memory_space<vmem>>, vector<9x512xf32>
    %c0_1 = arith.constant 0 : index
    %c0_2 = arith.constant 0 : index
    %1 = vector.load %arg0[%c0_1, %c0_2] : memref<4x512xf32, #tpu.memory_space<vmem>>, vector<4x512xf32>
    %c17_i32 = arith.constant 17 : i32
    %2 = tpu.dynamic_rotate %1 by %c17_i32 dim 1 : vector<4x512xf32>, i32 -> vector<4x512xf32>
    %3 = vector.extract_strided_slice %0 {offsets = [0, 0], sizes = [1, 512], strides = [1, 1]} : vector<9x512xf32> to vector<1x512xf32>
    %4 = vector.broadcast %3 : vector<1x512xf32> to vector<4x512xf32>
    %5 = arith.mulf %2, %4 : vector<4x512xf32>
    %c16_i32 = arith.constant 16 : i32
    %6 = tpu.dynamic_rotate %1 by %c16_i32 dim 1 : vector<4x512xf32>, i32 -> vector<4x512xf32>
    %7 = vector.extract_strided_slice %0 {offsets = [1, 0], sizes = [1, 512], strides = [1, 1]} : vector<9x512xf32> to vector<1x512xf32>
    %8 = vector.broadcast %7 : vector<1x512xf32> to vector<4x512xf32>
    %9 = arith.mulf %6, %8 : vector<4x512xf32>
    %c15_i32 = arith.constant 15 : i32
    %10 = tpu.dynamic_rotate %1 by %c15_i32 dim 1 : vector<4x512xf32>, i32 -> vector<4x512xf32>
    %11 = vector.extract_strided_slice %0 {offsets = [2, 0], sizes = [1, 512], strides = [1, 1]} : vector<9x512xf32> to vector<1x512xf32>
    %12 = vector.broadcast %11 : vector<1x512xf32> to vector<4x512xf32>
    %13 = arith.mulf %10, %12 : vector<4x512xf32>
    %c1_i32 = arith.constant 1 : i32
    %14 = tpu.dynamic_rotate %1 by %c1_i32 dim 1 : vector<4x512xf32>, i32 -> vector<4x512xf32>
    %15 = vector.extract_strided_slice %0 {offsets = [3, 0], sizes = [1, 512], strides = [1, 1]} : vector<9x512xf32> to vector<1x512xf32>
    %16 = vector.broadcast %15 : vector<1x512xf32> to vector<4x512xf32>
    %17 = arith.mulf %14, %16 : vector<4x512xf32>
    %c511_i32 = arith.constant 511 : i32
    %18 = tpu.dynamic_rotate %1 by %c511_i32 dim 1 : vector<4x512xf32>, i32 -> vector<4x512xf32>
    %19 = vector.extract_strided_slice %0 {offsets = [5, 0], sizes = [1, 512], strides = [1, 1]} : vector<9x512xf32> to vector<1x512xf32>
    %20 = vector.broadcast %19 : vector<1x512xf32> to vector<4x512xf32>
    %21 = arith.mulf %18, %20 : vector<4x512xf32>
    %c497_i32 = arith.constant 497 : i32
    %22 = tpu.dynamic_rotate %1 by %c497_i32 dim 1 : vector<4x512xf32>, i32 -> vector<4x512xf32>
    %23 = vector.extract_strided_slice %0 {offsets = [6, 0], sizes = [1, 512], strides = [1, 1]} : vector<9x512xf32> to vector<1x512xf32>
    %24 = vector.broadcast %23 : vector<1x512xf32> to vector<4x512xf32>
    %25 = arith.mulf %22, %24 : vector<4x512xf32>
    %c496_i32 = arith.constant 496 : i32
    %26 = tpu.dynamic_rotate %1 by %c496_i32 dim 1 : vector<4x512xf32>, i32 -> vector<4x512xf32>
    %27 = vector.extract_strided_slice %0 {offsets = [7, 0], sizes = [1, 512], strides = [1, 1]} : vector<9x512xf32> to vector<1x512xf32>
    %28 = vector.broadcast %27 : vector<1x512xf32> to vector<4x512xf32>
    %29 = arith.mulf %26, %28 : vector<4x512xf32>
    %c495_i32 = arith.constant 495 : i32
    %30 = tpu.dynamic_rotate %1 by %c495_i32 dim 1 : vector<4x512xf32>, i32 -> vector<4x512xf32>
    %31 = vector.extract_strided_slice %0 {offsets = [8, 0], sizes = [1, 512], strides = [1, 1]} : vector<9x512xf32> to vector<1x512xf32>
    %32 = vector.broadcast %31 : vector<1x512xf32> to vector<4x512xf32>
    %33 = arith.mulf %30, %32 : vector<4x512xf32>
    %c0_3 = arith.constant 0 : index
    %c0_4 = arith.constant 0 : index
    %34 = vector.load %arg1[%c0_3, %c0_4] : memref<4x512xf32, #tpu.memory_space<vmem>>, vector<4x512xf32>
    %c17_i32_5 = arith.constant 17 : i32
    %35 = tpu.dynamic_rotate %34 by %c17_i32_5 dim 1 : vector<4x512xf32>, i32 -> vector<4x512xf32>
    %36 = vector.extract_strided_slice %0 {offsets = [0, 0], sizes = [1, 512], strides = [1, 1]} : vector<9x512xf32> to vector<1x512xf32>
    %37 = vector.broadcast %36 : vector<1x512xf32> to vector<4x512xf32>
    %38 = arith.mulf %35, %37 : vector<4x512xf32>
    %c16_i32_6 = arith.constant 16 : i32
    %39 = tpu.dynamic_rotate %34 by %c16_i32_6 dim 1 : vector<4x512xf32>, i32 -> vector<4x512xf32>
    %40 = vector.extract_strided_slice %0 {offsets = [1, 0], sizes = [1, 512], strides = [1, 1]} : vector<9x512xf32> to vector<1x512xf32>
    %41 = vector.broadcast %40 : vector<1x512xf32> to vector<4x512xf32>
    %42 = arith.mulf %39, %41 : vector<4x512xf32>
    %c15_i32_7 = arith.constant 15 : i32
    %43 = tpu.dynamic_rotate %34 by %c15_i32_7 dim 1 : vector<4x512xf32>, i32 -> vector<4x512xf32>
    %44 = vector.extract_strided_slice %0 {offsets = [2, 0], sizes = [1, 512], strides = [1, 1]} : vector<9x512xf32> to vector<1x512xf32>
    %45 = vector.broadcast %44 : vector<1x512xf32> to vector<4x512xf32>
    %46 = arith.mulf %43, %45 : vector<4x512xf32>
    %c1_i32_8 = arith.constant 1 : i32
    %47 = tpu.dynamic_rotate %34 by %c1_i32_8 dim 1 : vector<4x512xf32>, i32 -> vector<4x512xf32>
    %48 = vector.extract_strided_slice %0 {offsets = [3, 0], sizes = [1, 512], strides = [1, 1]} : vector<9x512xf32> to vector<1x512xf32>
    %49 = vector.broadcast %48 : vector<1x512xf32> to vector<4x512xf32>
    %50 = arith.mulf %47, %49 : vector<4x512xf32>
    %c511_i32_9 = arith.constant 511 : i32
    %51 = tpu.dynamic_rotate %34 by %c511_i32_9 dim 1 : vector<4x512xf32>, i32 -> vector<4x512xf32>
    %52 = vector.extract_strided_slice %0 {offsets = [5, 0], sizes = [1, 512], strides = [1, 1]} : vector<9x512xf32> to vector<1x512xf32>
    %53 = vector.broadcast %52 : vector<1x512xf32> to vector<4x512xf32>
    %54 = arith.mulf %51, %53 : vector<4x512xf32>
    %c497_i32_10 = arith.constant 497 : i32
    %55 = tpu.dynamic_rotate %34 by %c497_i32_10 dim 1 : vector<4x512xf32>, i32 -> vector<4x512xf32>
    %56 = vector.extract_strided_slice %0 {offsets = [6, 0], sizes = [1, 512], strides = [1, 1]} : vector<9x512xf32> to vector<1x512xf32>
    %57 = vector.broadcast %56 : vector<1x512xf32> to vector<4x512xf32>
    %58 = arith.mulf %55, %57 : vector<4x512xf32>
    %c496_i32_11 = arith.constant 496 : i32
    %59 = tpu.dynamic_rotate %34 by %c496_i32_11 dim 1 : vector<4x512xf32>, i32 -> vector<4x512xf32>
    %60 = vector.extract_strided_slice %0 {offsets = [7, 0], sizes = [1, 512], strides = [1, 1]} : vector<9x512xf32> to vector<1x512xf32>
    %61 = vector.broadcast %60 : vector<1x512xf32> to vector<4x512xf32>
    %62 = arith.mulf %59, %61 : vector<4x512xf32>
    %c495_i32_12 = arith.constant 495 : i32
    %63 = tpu.dynamic_rotate %34 by %c495_i32_12 dim 1 : vector<4x512xf32>, i32 -> vector<4x512xf32>
    %64 = vector.extract_strided_slice %0 {offsets = [8, 0], sizes = [1, 512], strides = [1, 1]} : vector<9x512xf32> to vector<1x512xf32>
    %65 = vector.broadcast %64 : vector<1x512xf32> to vector<4x512xf32>
    %66 = arith.mulf %63, %65 : vector<4x512xf32>
    %67 = tpu.concatenate %5, %9, %13, %17, %1, %21, %25, %29, %33, %38, %42, %46, %50, %34, %54, %58 in 0 : vector<4x512xf32>, vector<4x512xf32>, vector<4x512xf32>, vector<4x512xf32>, vector<4x512xf32>, vector<4x512xf32>, vector<4x512xf32>, vector<4x512xf32>, vector<4x512xf32>, vector<4x512xf32>, vector<4x512xf32>, vector<4x512xf32>, vector<4x512xf32>, vector<4x512xf32>, vector<4x512xf32>, vector<4x512xf32> -> vector<64x512xf32>
    %68 = tpu.concatenate %62, %66 in 0 : vector<4x512xf32>, vector<4x512xf32> -> vector<8x512xf32>
    %69 = tpu.concatenate %67, %68 in 0 : vector<64x512xf32>, vector<8x512xf32> -> vector<72x512xf32>
    %c0_13 = arith.constant 0 : index
    %c0_14 = arith.constant 0 : index
    %70 = vector.load %arg3[%c0_13, %c0_14] : memref<4x72xf32, #tpu.memory_space<vmem>>, vector<4x72xf32>
    %cst = arith.constant dense<0.000000e+00> : vector<4x512xf32>
    %71 = tpu.matmul %70, %69, %cst {dimension_numbers = #tpu.dot_dimension_numbers<[1], [0], [0], [1], [0, 0, 1, 1], [], []>} : vector<4x72xf32>, vector<72x512xf32>, vector<4x512xf32> -> vector<4x512xf32>
    %c0_15 = arith.constant 0 : index
    %c0_16 = arith.constant 0 : index
    %72 = vector.load %arg4[%c0_15, %c0_16] : memref<4x1xf32, #tpu.memory_space<vmem>>, vector<4x1xf32>
    %c0_17 = arith.constant 0 : index
    %c0_18 = arith.constant 0 : index
    %73 = vector.load %arg5[%c0_17, %c0_18] : memref<4x1xf32, #tpu.memory_space<vmem>>, vector<4x1xf32>
    %cst_19 = arith.constant dense<0.000000e+00> : vector<4xf32>
    %74 = vector.multi_reduction <add>, %71, %cst_19 [1] : vector<4x512xf32> to vector<4xf32>
    %75 = vector.shape_cast %74 : vector<4xf32> to vector<4x1xf32>
    %76 = arith.mulf %71, %71 : vector<4x512xf32>
    %cst_20 = arith.constant dense<0.000000e+00> : vector<4xf32>
    %77 = vector.multi_reduction <add>, %76, %cst_20 [1] : vector<4x512xf32> to vector<4xf32>
    %78 = vector.shape_cast %77 : vector<4xf32> to vector<4x1xf32>
    %cst_21 = arith.constant 5.120000e+02 : f32
    %79 = vector.broadcast %cst_21 : f32 to vector<4x1xf32>
    %80 = arith.divf %75, %79 : vector<4x1xf32>
    %cst_22 = arith.constant 5.120000e+02 : f32
    %81 = vector.broadcast %cst_22 : f32 to vector<4x1xf32>
    %82 = arith.divf %78, %81 : vector<4x1xf32>
    %83 = arith.mulf %80, %80 : vector<4x1xf32>
    %84 = arith.subf %82, %83 : vector<4x1xf32>
    %cst_23 = arith.constant 9.99999974E-6 : f32
    %85 = vector.broadcast %cst_23 : f32 to vector<4x1xf32>
    %86 = arith.addf %84, %85 : vector<4x1xf32>
    %87 = math.rsqrt %86 : vector<4x1xf32>
    %88 = arith.mulf %72, %87 : vector<4x1xf32>
    %89 = arith.mulf %80, %88 : vector<4x1xf32>
    %90 = arith.subf %73, %89 : vector<4x1xf32>
    %91 = vector.broadcast %88 : vector<4x1xf32> to vector<4x512xf32>
    %92 = arith.mulf %71, %91 : vector<4x512xf32>
    %93 = vector.broadcast %90 : vector<4x1xf32> to vector<4x512xf32>
    %94 = arith.addf %92, %93 : vector<4x512xf32>
    %cst_24 = arith.constant 0.000000e+00 : f32
    %95 = vector.broadcast %cst_24 : f32 to vector<4x512xf32>
    %96 = arith.maximumf %94, %95 : vector<4x512xf32>
    %c0_25 = arith.constant 0 : index
    %c0_26 = arith.constant 0 : index
    %97 = vector.load %arg6[%c0_25, %c0_26] : memref<4x512xf32, #tpu.memory_space<vmem>>, vector<4x512xf32>
    tpu.vector_store %arg6[%c0_25, %c0_26], %96 {strides = array<i32>} : memref<4x512xf32, #tpu.memory_space<vmem>>, vector<4x512xf32>,
    return
  }
}

module attributes {stable_mosaic.version = 11 : i64} {
  func.func @_conv3x3_bn_relu_kernel(%arg0: memref<4x512xf32, #tpu.memory_space<vmem>>, %arg1: memref<9x512xf32, #tpu.memory_space<vmem>>, %arg2: memref<4x36xf32, #tpu.memory_space<vmem>>, %arg3: memref<4x1xf32, #tpu.memory_space<vmem>>, %arg4: memref<4x1xf32, #tpu.memory_space<vmem>>, %arg5: memref<4x512xf32, #tpu.memory_space<vmem>>) attributes {dimension_semantics = [], scalar_prefetch = 0 : i64, scratch_operands = 0 : i64, tpu.core_type = #tpu.core_type<tc>} {
    %c0 = arith.constant 0 : index
    %c0_0 = arith.constant 0 : index
    %0 = vector.load %arg1[%c0, %c0_0] : memref<9x512xf32, #tpu.memory_space<vmem>>, vector<9x512xf32>
    %c0_1 = arith.constant 0 : index
    %c0_2 = arith.constant 0 : index
    %1 = vector.load %arg0[%c0_1, %c0_2] : memref<4x512xf32, #tpu.memory_space<vmem>>, vector<4x512xf32>
    %c17_i32 = arith.constant 17 : i32
    %2 = tpu.dynamic_rotate %1 by %c17_i32 dim 1 : vector<4x512xf32>, i32 -> vector<4x512xf32>
    %3 = vector.extract_strided_slice %0 {offsets = [0, 0], sizes = [1, 512], strides = [1, 1]} : vector<9x512xf32> to vector<1x512xf32>
    %4 = vector.broadcast %3 : vector<1x512xf32> to vector<4x512xf32>
    %5 = arith.mulf %2, %4 : vector<4x512xf32>
    %c16_i32 = arith.constant 16 : i32
    %6 = tpu.dynamic_rotate %1 by %c16_i32 dim 1 : vector<4x512xf32>, i32 -> vector<4x512xf32>
    %7 = vector.extract_strided_slice %0 {offsets = [1, 0], sizes = [1, 512], strides = [1, 1]} : vector<9x512xf32> to vector<1x512xf32>
    %8 = vector.broadcast %7 : vector<1x512xf32> to vector<4x512xf32>
    %9 = arith.mulf %6, %8 : vector<4x512xf32>
    %c15_i32 = arith.constant 15 : i32
    %10 = tpu.dynamic_rotate %1 by %c15_i32 dim 1 : vector<4x512xf32>, i32 -> vector<4x512xf32>
    %11 = vector.extract_strided_slice %0 {offsets = [2, 0], sizes = [1, 512], strides = [1, 1]} : vector<9x512xf32> to vector<1x512xf32>
    %12 = vector.broadcast %11 : vector<1x512xf32> to vector<4x512xf32>
    %13 = arith.mulf %10, %12 : vector<4x512xf32>
    %c1_i32 = arith.constant 1 : i32
    %14 = tpu.dynamic_rotate %1 by %c1_i32 dim 1 : vector<4x512xf32>, i32 -> vector<4x512xf32>
    %15 = vector.extract_strided_slice %0 {offsets = [3, 0], sizes = [1, 512], strides = [1, 1]} : vector<9x512xf32> to vector<1x512xf32>
    %16 = vector.broadcast %15 : vector<1x512xf32> to vector<4x512xf32>
    %17 = arith.mulf %14, %16 : vector<4x512xf32>
    %c511_i32 = arith.constant 511 : i32
    %18 = tpu.dynamic_rotate %1 by %c511_i32 dim 1 : vector<4x512xf32>, i32 -> vector<4x512xf32>
    %19 = vector.extract_strided_slice %0 {offsets = [5, 0], sizes = [1, 512], strides = [1, 1]} : vector<9x512xf32> to vector<1x512xf32>
    %20 = vector.broadcast %19 : vector<1x512xf32> to vector<4x512xf32>
    %21 = arith.mulf %18, %20 : vector<4x512xf32>
    %c497_i32 = arith.constant 497 : i32
    %22 = tpu.dynamic_rotate %1 by %c497_i32 dim 1 : vector<4x512xf32>, i32 -> vector<4x512xf32>
    %23 = vector.extract_strided_slice %0 {offsets = [6, 0], sizes = [1, 512], strides = [1, 1]} : vector<9x512xf32> to vector<1x512xf32>
    %24 = vector.broadcast %23 : vector<1x512xf32> to vector<4x512xf32>
    %25 = arith.mulf %22, %24 : vector<4x512xf32>
    %c496_i32 = arith.constant 496 : i32
    %26 = tpu.dynamic_rotate %1 by %c496_i32 dim 1 : vector<4x512xf32>, i32 -> vector<4x512xf32>
    %27 = vector.extract_strided_slice %0 {offsets = [7, 0], sizes = [1, 512], strides = [1, 1]} : vector<9x512xf32> to vector<1x512xf32>
    %28 = vector.broadcast %27 : vector<1x512xf32> to vector<4x512xf32>
    %29 = arith.mulf %26, %28 : vector<4x512xf32>
    %c495_i32 = arith.constant 495 : i32
    %30 = tpu.dynamic_rotate %1 by %c495_i32 dim 1 : vector<4x512xf32>, i32 -> vector<4x512xf32>
    %31 = vector.extract_strided_slice %0 {offsets = [8, 0], sizes = [1, 512], strides = [1, 1]} : vector<9x512xf32> to vector<1x512xf32>
    %32 = vector.broadcast %31 : vector<1x512xf32> to vector<4x512xf32>
    %33 = arith.mulf %30, %32 : vector<4x512xf32>
    %34 = tpu.concatenate %5, %9, %13, %17, %1, %21, %25, %29, %33 in 0 : vector<4x512xf32>, vector<4x512xf32>, vector<4x512xf32>, vector<4x512xf32>, vector<4x512xf32>, vector<4x512xf32>, vector<4x512xf32>, vector<4x512xf32>, vector<4x512xf32> -> vector<36x512xf32>
    %c0_3 = arith.constant 0 : index
    %c0_4 = arith.constant 0 : index
    %35 = vector.load %arg2[%c0_3, %c0_4] : memref<4x36xf32, #tpu.memory_space<vmem>>, vector<4x36xf32>
    %cst = arith.constant dense<0.000000e+00> : vector<4x512xf32>
    %36 = tpu.matmul %35, %34, %cst {dimension_numbers = #tpu.dot_dimension_numbers<[1], [0], [0], [1], [0, 0, 1, 1], [], []>} : vector<4x36xf32>, vector<36x512xf32>, vector<4x512xf32> -> vector<4x512xf32>
    %c0_5 = arith.constant 0 : index
    %c0_6 = arith.constant 0 : index
    %37 = vector.load %arg3[%c0_5, %c0_6] : memref<4x1xf32, #tpu.memory_space<vmem>>, vector<4x1xf32>
    %c0_7 = arith.constant 0 : index
    %c0_8 = arith.constant 0 : index
    %38 = vector.load %arg4[%c0_7, %c0_8] : memref<4x1xf32, #tpu.memory_space<vmem>>, vector<4x1xf32>
    %cst_9 = arith.constant dense<0.000000e+00> : vector<4xf32>
    %39 = vector.multi_reduction <add>, %36, %cst_9 [1] : vector<4x512xf32> to vector<4xf32>
    %40 = vector.shape_cast %39 : vector<4xf32> to vector<4x1xf32>
    %41 = arith.mulf %36, %36 : vector<4x512xf32>
    %cst_10 = arith.constant dense<0.000000e+00> : vector<4xf32>
    %42 = vector.multi_reduction <add>, %41, %cst_10 [1] : vector<4x512xf32> to vector<4xf32>
    %43 = vector.shape_cast %42 : vector<4xf32> to vector<4x1xf32>
    %cst_11 = arith.constant 5.120000e+02 : f32
    %44 = vector.broadcast %cst_11 : f32 to vector<4x1xf32>
    %45 = arith.divf %40, %44 : vector<4x1xf32>
    %cst_12 = arith.constant 5.120000e+02 : f32
    %46 = vector.broadcast %cst_12 : f32 to vector<4x1xf32>
    %47 = arith.divf %43, %46 : vector<4x1xf32>
    %48 = arith.mulf %45, %45 : vector<4x1xf32>
    %49 = arith.subf %47, %48 : vector<4x1xf32>
    %cst_13 = arith.constant 9.99999974E-6 : f32
    %50 = vector.broadcast %cst_13 : f32 to vector<4x1xf32>
    %51 = arith.addf %49, %50 : vector<4x1xf32>
    %52 = math.rsqrt %51 : vector<4x1xf32>
    %53 = arith.mulf %37, %52 : vector<4x1xf32>
    %54 = arith.mulf %45, %53 : vector<4x1xf32>
    %55 = arith.subf %38, %54 : vector<4x1xf32>
    %56 = vector.broadcast %53 : vector<4x1xf32> to vector<4x512xf32>
    %57 = arith.mulf %36, %56 : vector<4x512xf32>
    %58 = vector.broadcast %55 : vector<4x1xf32> to vector<4x512xf32>
    %59 = arith.addf %57, %58 : vector<4x512xf32>
    %cst_14 = arith.constant 0.000000e+00 : f32
    %60 = vector.broadcast %cst_14 : f32 to vector<4x512xf32>
    %61 = arith.maximumf %59, %60 : vector<4x512xf32>
    %c0_15 = arith.constant 0 : index
    %c0_16 = arith.constant 0 : index
    %62 = vector.load %arg5[%c0_15, %c0_16] : memref<4x512xf32, #tpu.memory_space<vmem>>, vector<4x512xf32>
    tpu.vector_store %arg5[%c0_15, %c0_16], %61 {strides = array<i32>} : memref<4x512xf32, #tpu.memory_space<vmem>>, vector<4x512xf32>,
    return
  }
}

</mosaic_0001>

<bundles_post_ra>
// kernel: decoder_block_forward.3
= control target key start
LH: loop header
LB: loop body
LE: loop exit
PB: predicated region body
PF: predicated region fallthrough
CT: control target
= control target key end

     0   :  { %vm20_vm0 = vcmask 64512   ;;  %v147_v7 = vmov 512.0   ;;  %v148_v11 = vmov 0   ;;  %vm108_vm5 = vcmask 1043456   ;;  %s207_s0 = inlined_call_operand.vmem [shape: f32[8,128], index: 0, kind: input, shape index: {}]   ;;  %s208_s1 = inlined_call_operand.vmem [shape: f32[16,8], index: 1, kind: input, shape index: {}]   ;;  %s209_s2 = inlined_call_operand.vmem [shape: f32[4,1], index: 2, kind: input, shape index: {}]   ;;  %s210_s3 = inlined_call_operand.vmem [shape: f32[4,1], index: 3, kind: input, shape index: {}]   ;;  %s211_s4 = inlined_call_operand.vmem [shape: f32[16,128], index: 4, kind: output, shape index: {}]  }
   0x1   :  { %v19_v0 = vld [vmem:[%s207_s0] sm:$0xff]  ;;  %v18_v2 = vld [vmem:[%s208_s1 + $0x8] sm:$0xff]  ;;  %143 = vrcp.f32 %v147_v7  ;;  %141 = vset.pattern.permute.xlu2 %v148_v11  ;;  %142 = vset.pattern.permute.xlu0 %v148_v11 }
   0x2   :  { %v17_v1 = vld [vmem:[%s208_s1] sm:$0xff]  ;;  %42 = vmatpush.msra.mxu0 %v19_v0  ;;  %138 = vmatpush.msra.mxu1 %v19_v0 }
   0x3   :  { %136 = vmatmul.msk.f32.vlgmr.msra.gmra.mxu0 %vm20_vm0, %v17_v1  ;;  %137 = vmatmul.msk.f32.vlgmr.msra.gmra.mxu1 %vm20_vm0, %v18_v2  ;;  %v89_v39 = vld [vmem:[%s209_s2] sm:$0xf] }
   0x4   :  { %v102_v43 = vld [vmem:[%s210_s3] sm:$0xf] }
   0x7   :  { %v144_v8 = vpop.eup %143 }
   0x8   :  { %v79_v9 = vmul.f32 512.0, %v144_v8  ;;  %vm83_vm1 = vweird.f32 %v144_v8 }
   0xa   :  { %v80_v10 = vsub.f32 1.0, %v79_v9 }
   0xc   :  { %v81_v15 = vmul.f32 %v144_v8, %v80_v10 }
   0xe   :  { %v82_v19 = vadd.f32 %v144_v8, %v81_v15 }
  0x10   :  { %v84_v24 = vsel %vm83_vm1, %v144_v8, %v82_v19 }
  0x80   :  { %v183_v3 = vpop.f32.mrf.mxu0  ;;  %v185_v4 = vpop.f32.mrf.mxu1 }
  0x81   :  { %52 = vadd.xlane.f32.xlu1 %v185_v4  ;;  %50 = vadd.xlane.f32.xlu0 %v183_v3  ;;  %v55_v5 = vmul.f32 %v185_v4, %v185_v4  ;;  %v54_v6 = vmul.f32 %v183_v3, %v183_v3 }
  0x89   :  { %58 = vadd.xlane.f32.xlu1 %v55_v5  ;;  %56 = vadd.xlane.f32.xlu0 %v54_v6 }
  0xf4   :  { %v53_v12 = vpop.xlane.xlu1 %52  ;;  %v51_v13 = vpop.xlane.xlu0 %50 }
  0xf5   :  { %v61_v14 = vrot.slane %v51_v13, 4  ;;  %v71_v17 = vrot.slane %v53_v12, 4 }
  0xf7   :  { %v63_v16 = vadd.f32 %v61_v14, %v51_v13 }
  0xf9   :  { %v68_v18 = vadd.f32 %v63_v16, %v53_v12 }
  0xfb   :  { %v73_v21 = vadd.f32 %v71_v17, %v68_v18 }
  0xfc   :  { %v57_v20 = vpop.xlane.xlu0 %56  ;;  %v59_v23 = vpop.xlane.xlu1 %58 }
  0xfd   :  { %v65_v22 = vrot.slane %v57_v20, 4  ;;  %v75_v26 = vrot.slane %v59_v23, 4  ;;  %v85_v27 = vmul.f32 %v84_v24, %v73_v21 }
  0xff   :  { %v67_v25 = vadd.f32 %v65_v22, %v57_v20  ;;  %v87_v30 = vmul.f32 %v85_v27, %v85_v27 }
 0x101   :  { %v69_v28 = vadd.f32 %v67_v25, %v59_v23 }
 0x103   :  { %v77_v29 = vadd.f32 %v75_v26, %v69_v28 }
 0x105   :  { %v86_v31 = vmul.f32 %v84_v24, %v77_v29 }
 0x107   :  { %v88_v32 = vsub.f32 %v86_v31, %v87_v30 }
 0x109   :  { %v90_v33 = vadd.f32 1e-05, %v88_v32 }
 0x10b   :  { %145 = vrsqrt.f32 %v90_v33  ;;  %vm97_vm3 = vweird.f32 %v90_v33 }
 0x111   :  { %v146_v34 = vpop.eup %145 }
 0x112   :  { %v92_v35 = vmul.f32 %v146_v34, %v90_v33  ;;  %vm98_vm2 = vweird.f32 %v146_v34 }
 0x113   :  { %vm99_vm4 = vmor %vm97_vm3, %vm98_vm2 }
 0x114   :  { %v93_v36 = vmul.f32 %v146_v34, %v92_v35 }
 0x116   :  { %v94_v37 = vmul.f32 0.5, %v93_v36 }
 0x118   :  { %v95_v38 = vsub.f32 1.5, %v94_v37 }
 0x11a   :  { %v96_v40 = vmul.f32 %v146_v34, %v95_v38 }
 0x11c   :  { %v100_v41 = vsel %vm99_vm4, %v146_v34, %v96_v40 }
 0x11d   :  { %v101_v42 = vmul.f32 %v100_v41, %v89_v39 }
 0x11f   :  { %v106_v44 = vrot.slane %v101_v42, 4  ;;  %v103_v45 = vmul.f32 %v101_v42, %v85_v27 }
 0x121   :  { %v109_v46 = vsel %vm108_vm5, %v101_v42, %v106_v44  ;;  %v104_v47 = vsub.f32 %v102_v43, %v103_v45 }
 0x122   :  { %116 = vperm.xlu2 %141, %v109_v46  }
 0x123   :  { %v111_v48 = vrot.slane %v104_v47, 4 }
 0x125   :  { %v113_v49 = vsel %vm108_vm5, %v104_v47, %v111_v48 }
 0x12a   :  { %123 = vperm.xlu2 %141, %v113_v49  }
 0x17c   :  { %v117_v50 = vpop.permute.xlu2 %116 }
 0x17d   :  { %v119_v51 = vmul.f32 %v117_v50, %v183_v3  ;;  %v120_v52 = vmul.f32 %v117_v50, %v185_v4 }
 0x184   :  { %v124_v53 = vpop.permute.xlu2 %123 }
 0x185   :  { %v126_v54 = vadd.f32 %v124_v53, %v119_v51  ;;  %v127_v55 = vadd.f32 %v124_v53, %v120_v52 }
 0x187   :  { %v128_v56 = vmax.f32 %v126_v54, 0.0  ;;  %v129_v57 = vmax.f32 %v127_v55, 0.0 }
 0x189   :  { %130 = vst [vmem:[%s211_s4] sm:$0xff] %v128_v56 }
 0x18a   :  { %131 = vst [vmem:[%s211_s4 + $0x8] sm:$0xff] %v129_v57 }

// kernel: decoder_block_forward.4
= control target key start
LH: loop header
LB: loop body
LE: loop exit
PB: predicated region body
PF: predicated region fallthrough
CT: control target
= control target key end

     0   :  { %s865_s25 = smov 1   ;;  %s866_s26 = smov 127   ;;  %vm620_vm1 = vcmask 1043456   ;;  %vm670_vm9 = vcmask 588800   ;;  %s1609_s0 = inlined_call_operand.vmem [shape: f32[4,512], index: 0, kind: input, shape index: {}]   ;;  %s1610_s2 = inlined_call_operand.vmem [shape: f32[9,512], index: 2, kind: input, shape index: {}]   ;;  %s1611_s1 = inlined_call_operand.vmem [shape: f32[4,512], index: 1, kind: input, shape index: {}]   ;;  %s1612_s3 = inlined_call_operand.vmem [shape: f32[4,72], index: 3, kind: input, shape index: {}]   ;;  %s1613_s4 = inlined_call_operand.vmem [shape: f32[4,1], index: 4, kind: input, shape index: {}]   ;;  %s1614_s5 = inlined_call_operand.vmem [shape: f32[4,1], index: 5, kind: input, shape index: {}]   ;;  %s1615_s6 = inlined_call_operand.vmem [shape: f32[4,512], index: 6, kind: output, shape index: {}]  }
   0x1   :  { %v912_v0 = vld [vmem:[%s1609_s0] sm:$0xff]  ;;  %v917_v1 = vld [vmem:[%s1609_s0 + $0x8] sm:$0xff]  ;;  %s864_s0 = smov 16   ;;  %s867_s27 = smov 113  }
   0x2   :  { %35 = vst [vmem:[#allocation1] ss:$2 sm:$0xff] %v912_v0  ;;  %s868_s28 = smov 112   ;;  %v979_v30 = vld [vmem:[%s1611_s1] sm:$0xff]  ;;  %v984_v31 = vld [vmem:[%s1611_s1 + $0x8] sm:$0xff]  ;;  %s869_s9 = smov 111  }
   0x3   :  { %37 = vst [vmem:[#allocation1 + $0x10] ss:$2 sm:$0xff] %v917_v1  ;;  %s870_s1 = smov 17   ;;  %s871_s10 = smov 15  }
   0x9   :  { %v921_v2 = vld.sshfl [vmem:[#allocation1] sm:$0xff pattern:$0x75316420]  ;;  %v923_v3 = vld.sshfl [vmem:[#allocation1 + $0x8] sm:$0xff pattern:$0x75316420] }
   0xa   :  { %69 = vst [vmem:[#allocation1] ss:$2 sm:$0xff] %v912_v0  ;;  %v926_v4 = vld.sshfl [vmem:[#allocation1 + $0x10] sm:$0xff pattern:$0x75316420] }
   0xb   :  { %v928_v5 = vld.sshfl [vmem:[#allocation1 + $0x18] sm:$0xff pattern:$0x75316420] }
   0xc   :  { %71 = vst [vmem:[#allocation1 + $0x10] ss:$2 sm:$0xff] %v917_v1 }
  0x11   :  { %v73_v6 = vld.sshfl [vmem:[#allocation1 + $0x8] sm:$0xff pattern:$0x75316420]  ;;  %v931_v7 = vld.sshfl [vmem:[#allocation1] sm:$0xff pattern:$0x75316420] }
  0x12   :  { %82 = vrot.lane.b32.xlu0 %v73_v6, %s864_s0  ;;  %101 = vst [vmem:[#allocation1] ss:$2 sm:$0xff] %v912_v0 }
  0x13   :  { %v935_v8 = vld.sshfl [vmem:[#allocation1 + $0x10] sm:$0xff pattern:$0x75316420]  ;;  %v937_v9 = vld.sshfl [vmem:[#allocation1 + $0x18] sm:$0xff pattern:$0x75316420] }
  0x14   :  { %103 = vst [vmem:[#allocation1 + $0x10] ss:$2 sm:$0xff] %v917_v1 }
  0x19   :  { %v940_v10 = vld.sshfl [vmem:[#allocation1] sm:$0xff pattern:$0x75316420]  ;;  %v942_v11 = vld.sshfl [vmem:[#allocation1 + $0x8] sm:$0xff pattern:$0x75316420] }
  0x1a   :  { %133 = vst [vmem:[#allocation1] ss:$2 sm:$0xff] %v912_v0 }
  0x1b   :  { %v945_v12 = vld.sshfl [vmem:[#allocation1 + $0x10] sm:$0xff pattern:$0x75316420]  ;;  %v947_v13 = vld.sshfl [vmem:[#allocation1 + $0x18] sm:$0xff pattern:$0x75316420] }
  0x1c   :  { %135 = vst [vmem:[#allocation1 + $0x10] ss:$2 sm:$0xff] %v917_v1 }
  0x21   :  { %v137_v14 = vld.sshfl [vmem:[#allocation1 + $0x8] sm:$0xff pattern:$0x75316420]  ;;  %v950_v15 = vld.sshfl [vmem:[#allocation1] sm:$0xff pattern:$0x75316420] }
  0x22   :  { %146 = vrot.lane.b32.xlu0 %v137_v14, %s865_s25  ;;  %165 = vst [vmem:[#allocation1] ss:$2 sm:$0xff] %v912_v0 }
  0x23   :  { %v138_v16 = vld.sshfl [vmem:[#allocation1 + $0x10] sm:$0xff pattern:$0x75316420]  ;;  %v954_v17 = vld.sshfl [vmem:[#allocation1 + $0x18] sm:$0xff pattern:$0x75316420] }
  0x24   :  { %148 = vrot.lane.b32.xlu1 %v138_v16, %s865_s25  ;;  %167 = vst [vmem:[#allocation1 + $0x10] ss:$2 sm:$0xff] %v917_v1  ;;  %v54_v16 = vlaneseq }
  0x29   :  { %v168_v18 = vld.sshfl [vmem:[#allocation1] sm:$0xff pattern:$0x75316420]  ;;  %v958_v19 = vld.sshfl [vmem:[#allocation1 + $0x8] sm:$0xff pattern:$0x75316420] }
  0x2a   :  { %197 = vst [vmem:[#allocation1] ss:$2 sm:$0xff] %v912_v0 }
  0x2b   :  { %v171_v20 = vld.sshfl [vmem:[#allocation1 + $0x18] sm:$0xff pattern:$0x75316420]  ;;  %v170_v21 = vld.sshfl [vmem:[#allocation1 + $0x10] sm:$0xff pattern:$0x75316420] }
  0x2c   :  { %182 = vrot.lane.b32.xlu2 %v171_v20, %s866_s26  ;;  %180 = vrot.lane.b32.xlu1 %v170_v21, %s866_s26  ;;  %199 = vst [vmem:[#allocation1 + $0x10] ss:$2 sm:$0xff] %v917_v1  ;;  %v1030_v20 = vand.u32 127, %v54_v16  ;;  %v1035_v21 = vld [vmem:[%s1610_s2 + $0x18] sm:$0xff] }
  0x2e   :  { %vm184_vm0 = vcmp.lt.s32.totalorder %v1030_v20, 127  ;;  %vm248_vm2 = vcmp.lt.s32.totalorder %v1030_v20, 112  ;;  %vm216_vm3 = vcmp.lt.s32.totalorder %v1030_v20, 113  ;;  %vm280_vm4 = vcmp.lt.s32.totalorder %v1030_v20, 111 }
  0x2f   :  { %vm56_vm5 = vcmp.lt.s32.totalorder %v1030_v20, 17  ;;  %vm88_vm6 = vcmp.lt.s32.totalorder %v1030_v20, 16  ;;  %vm120_vm7 = vcmp.lt.s32.totalorder %v1030_v20, 15  ;;  %vm152_vm8 = vcmp.lt.s32.totalorder %v1030_v20, 1 }
  0x31   :  { %v200_v22 = vld.sshfl [vmem:[#allocation1] sm:$0xff pattern:$0x75316420]  ;;  %v964_v23 = vld.sshfl [vmem:[#allocation1 + $0x8] sm:$0xff pattern:$0x75316420] }
  0x32   :  { %229 = vst [vmem:[#allocation1] ss:$2 sm:$0xff] %v912_v0 }
  0x33   :  { %v203_v24 = vld.sshfl [vmem:[#allocation1 + $0x18] sm:$0xff pattern:$0x75316420]  ;;  %v202_v25 = vld.sshfl [vmem:[#allocation1 + $0x10] sm:$0xff pattern:$0x75316420] }
  0x34   :  { %214 = vrot.lane.b32.xlu1 %v203_v24, %s867_s27  ;;  %212 = vrot.lane.b32.xlu0 %v202_v25, %s867_s27  ;;  %231 = vst [vmem:[#allocation1 + $0x10] ss:$2 sm:$0xff] %v917_v1 }
  0x35   :  { %176 = vrot.lane.b32.xlu2 %v168_v18, %s866_s26 }
  0x39   :  { %v233_v26 = vld.sshfl [vmem:[#allocation1 + $0x8] sm:$0xff pattern:$0x75316420]  ;;  %v232_v27 = vld.sshfl [vmem:[#allocation1] sm:$0xff pattern:$0x75316420] }
  0x3a   :  { %261 = vst [vmem:[#allocation1] ss:$2 sm:$0xff] %v912_v0 }
  0x3b   :  { %v234_v28 = vld.sshfl [vmem:[#allocation1 + $0x10] sm:$0xff pattern:$0x75316420]  ;;  %v235_v29 = vld.sshfl [vmem:[#allocation1 + $0x18] sm:$0xff pattern:$0x75316420] }
  0x3c   :  { %208 = vrot.lane.b32.xlu0 %v200_v22, %s867_s27  ;;  %242 = vrot.lane.b32.xlu1 %v233_v26, %s868_s28  ;;  %263 = vst [vmem:[#allocation1 + $0x10] ss:$2 sm:$0xff] %v917_v1 }
  0x3d   :  { %244 = vrot.lane.b32.xlu2 %v234_v28, %s868_s28 }
  0x41   :  { %v264_v32 = vld.sshfl [vmem:[#allocation1] sm:$0xff pattern:$0x75316420]  ;;  %v265_v33 = vld.sshfl [vmem:[#allocation1 + $0x8] sm:$0xff pattern:$0x75316420] }
  0x42   :  { %297 = vst [vmem:[#allocation1] ss:$2 sm:$0xff] %v979_v30 }
  0x43   :  { %v266_v34 = vld.sshfl [vmem:[#allocation1 + $0x10] sm:$0xff pattern:$0x75316420]  ;;  %v267_v35 = vld.sshfl [vmem:[#allocation1 + $0x18] sm:$0xff pattern:$0x75316420] }
  0x44   :  { %246 = vrot.lane.b32.xlu0 %v235_v29, %s868_s28  ;;  %276 = vrot.lane.b32.xlu1 %v266_v34, %s869_s9  ;;  %299 = vst [vmem:[#allocation1 + $0x10] ss:$2 sm:$0xff] %v984_v31 }
  0x45   :  { %240 = vrot.lane.b32.xlu2 %v232_v27, %s868_s28 }
  0x49   :  { %v301_v36 = vld.sshfl [vmem:[#allocation1 + $0x8] sm:$0xff pattern:$0x75316420]  ;;  %v300_v37 = vld.sshfl [vmem:[#allocation1] sm:$0xff pattern:$0x75316420] }
  0x4a   :  { %324 = vst [vmem:[#allocation1] ss:$2 sm:$0xff] %v979_v30 }
  0x4b   :  { %v303_v38 = vld.sshfl [vmem:[#allocation1 + $0x18] sm:$0xff pattern:$0x75316420]  ;;  %v302_v39 = vld.sshfl [vmem:[#allocation1 + $0x10] sm:$0xff pattern:$0x75316420] }
  0x4c   :  { %272 = vrot.lane.b32.xlu0 %v264_v32, %s869_s9  ;;  %310 = vrot.lane.b32.xlu1 %v301_v36, %s870_s1  ;;  %326 = vst [vmem:[#allocation1 + $0x10] ss:$2 sm:$0xff] %v984_v31 }
  0x4d   :  { %278 = vrot.lane.b32.xlu2 %v267_v35, %s869_s9  ;;  %v1064_v35 = vld [vmem:[%s1610_s2 + $0x10] sm:$0xff] }
  0x4e   :  { %v1627_v36 = vperm.slane %v1064_v35, 5 }
  0x51   :  { %v328_v40 = vld.sshfl [vmem:[#allocation1 + $0x8] sm:$0xff pattern:$0x75316420]  ;;  %v327_v41 = vld.sshfl [vmem:[#allocation1] sm:$0xff pattern:$0x75316420] }
  0x52   :  { %351 = vst [vmem:[#allocation1] ss:$2 sm:$0xff] %v979_v30 }
  0x53   :  { %v329_v42 = vld.sshfl [vmem:[#allocation1 + $0x10] sm:$0xff pattern:$0x75316420]  ;;  %v330_v43 = vld.sshfl [vmem:[#allocation1 + $0x18] sm:$0xff pattern:$0x75316420] }
  0x54   :  { %314 = vrot.lane.b32.xlu0 %v303_v38, %s870_s1  ;;  %308 = vrot.lane.b32.xlu1 %v300_v37, %s870_s1  ;;  %353 = vst [vmem:[#allocation1 + $0x10] ss:$2 sm:$0xff] %v984_v31 }
  0x55   :  { %274 = vrot.lane.b32.xlu2 %v265_v33, %s869_s9 }
  0x59   :  { %v355_v44 = vld.sshfl [vmem:[#allocation1 + $0x8] sm:$0xff pattern:$0x75316420]  ;;  %v354_v45 = vld.sshfl [vmem:[#allocation1] sm:$0xff pattern:$0x75316420] }
  0x5a   :  { %378 = vst [vmem:[#allocation1] ss:$2 sm:$0xff] %v979_v30 }
  0x5b   :  { %v356_v46 = vld.sshfl [vmem:[#allocation1 + $0x10] sm:$0xff pattern:$0x75316420]  ;;  %v357_v47 = vld.sshfl [vmem:[#allocation1 + $0x18] sm:$0xff pattern:$0x75316420] }
  0x5c   :  { %339 = vrot.lane.b32.xlu1 %v329_v42, %s864_s0  ;;  %337 = vrot.lane.b32.xlu0 %v328_v40, %s864_s0  ;;  %380 = vst [vmem:[#allocation1 + $0x10] ss:$2 sm:$0xff] %v984_v31 }
  0x5d   :  { %312 = vrot.lane.b32.xlu2 %v302_v39, %s870_s1 }
  0x61   :  { %v382_v48 = vld.sshfl [vmem:[#allocation1 + $0x8] sm:$0xff pattern:$0x75316420]  ;;  %v381_v49 = vld.sshfl [vmem:[#allocation1] sm:$0xff pattern:$0x75316420] }
  0x62   :  { %405 = vst [vmem:[#allocation1] ss:$2 sm:$0xff] %v979_v30 }
  0x63   :  { %v383_v50 = vld.sshfl [vmem:[#allocation1 + $0x10] sm:$0xff pattern:$0x75316420]  ;;  %v384_v51 = vld.sshfl [vmem:[#allocation1 + $0x18] sm:$0xff pattern:$0x75316420] }
  0x64   :  { %341 = vrot.lane.b32.xlu1 %v330_v43, %s864_s0  ;;  %364 = vrot.lane.b32.xlu0 %v355_v44, %s871_s10  ;;  %407 = vst [vmem:[#allocation1 + $0x10] ss:$2 sm:$0xff] %v984_v31 }
  0x65   :  { %335 = vrot.lane.b32.xlu2 %v327_v41, %s864_s0 }
  0x69   :  { %v408_v52 = vld.sshfl [vmem:[#allocation1] sm:$0xff pattern:$0x75316420]  ;;  %v409_v53 = vld.sshfl [vmem:[#allocation1 + $0x8] sm:$0xff pattern:$0x75316420] }
  0x6a   :  { %432 = vst [vmem:[#allocation1] ss:$2 sm:$0xff] %v979_v30 }
  0x6b   :  { %v410_v54 = vld.sshfl [vmem:[#allocation1 + $0x10] sm:$0xff pattern:$0x75316420]  ;;  %v411_v55 = vld.sshfl [vmem:[#allocation1 + $0x18] sm:$0xff pattern:$0x75316420] }
  0x6c   :  { %366 = vrot.lane.b32.xlu1 %v356_v46, %s871_s10  ;;  %393 = vrot.lane.b32.xlu0 %v383_v50, %s865_s25  ;;  %434 = vst [vmem:[#allocation1 + $0x10] ss:$2 sm:$0xff] %v984_v31  ;;  %v1630_v50 = vperm.slane %v1064_v35, 6 }
  0x6d   :  { %368 = vrot.lane.b32.xlu2 %v357_v47, %s871_s10 }
  0x71   :  { %v435_v56 = vld.sshfl [vmem:[#allocation1] sm:$0xff pattern:$0x75316420]  ;;  %v436_v57 = vld.sshfl [vmem:[#allocation1 + $0x8] sm:$0xff pattern:$0x75316420] }
  0x72   :  { %459 = vst [vmem:[#allocation1] ss:$2 sm:$0xff] %v979_v30 }
  0x73   :  { %v437_v58 = vld.sshfl [vmem:[#allocation1 + $0x10] sm:$0xff pattern:$0x75316420]  ;;  %v438_v59 = vld.sshfl [vmem:[#allocation1 + $0x18] sm:$0xff pattern:$0x75316420] }
  0x74   :  { %420 = vrot.lane.b32.xlu1 %v410_v54, %s866_s26  ;;  %395 = vrot.lane.b32.xlu0 %v384_v51, %s865_s25  ;;  %461 = vst [vmem:[#allocation1 + $0x10] ss:$2 sm:$0xff] %v984_v31 }
  0x75   :  { %362 = vrot.lane.b32.xlu2 %v354_v45, %s871_s10 }
  0x79   :  { %v463_v60 = vld.sshfl [vmem:[#allocation1 + $0x8] sm:$0xff pattern:$0x75316420]  ;;  %v462_v63 = vld.sshfl [vmem:[#allocation1] sm:$0xff pattern:$0x75316420] }
  0x7a   :  { %486 = vst [vmem:[#allocation1] ss:$2 sm:$0xff] %v979_v30 }
  0x7b   :  { %v464_v61 = vld.sshfl [vmem:[#allocation1 + $0x10] sm:$0xff pattern:$0x75316420]  ;;  %v465_v62 = vld.sshfl [vmem:[#allocation1 + $0x18] sm:$0xff pattern:$0x75316420] }
  0x7c   :  { %389 = vrot.lane.b32.xlu0 %v381_v49, %s865_s25  ;;  %416 = vrot.lane.b32.xlu1 %v408_v52, %s866_s26  ;;  %488 = vst [vmem:[#allocation1 + $0x10] ss:$2 sm:$0xff] %v984_v31 }
  0x7d   :  { %391 = vrot.lane.b32.xlu2 %v382_v48, %s865_s25 }
  0x81   :  { %v489_v22 = vld.sshfl [vmem:[#allocation1] sm:$0xff pattern:$0x75316420]  ;;  %v490_v26 = vld.sshfl [vmem:[#allocation1 + $0x8] sm:$0xff pattern:$0x75316420] }
  0x82   :  { %537 = vst [vmem:[#allocation1] ss:$2 sm:$0xff] %v912_v0 }
  0x83   :  { %v491_v6 = vld.sshfl [vmem:[#allocation1 + $0x10] sm:$0xff pattern:$0x75316420]  ;;  %v492_v14 = vld.sshfl [vmem:[#allocation1 + $0x18] sm:$0xff pattern:$0x75316420] }
  0x84   :  { %418 = vrot.lane.b32.xlu1 %v409_v53, %s866_s26  ;;  %443 = vrot.lane.b32.xlu0 %v435_v56, %s867_s27  ;;  %539 = vst [vmem:[#allocation1 + $0x10] ss:$2 sm:$0xff] %v917_v1  ;;  %v1624_v1 = vperm.slane %v1035_v21, 5 }
  0x85   :  { %422 = vrot.lane.b32.xlu2 %v411_v55, %s866_s26 }
  0x86   :  { %v183_v18 = vpop.permute.xlu2 %182 }
  0x8b   :  { %v542_v24 = vld.sshfl [vmem:[#allocation1 + $0x10] sm:$0xff pattern:$0x75316420]  ;;  %v543_v25 = vld.sshfl [vmem:[#allocation1 + $0x18] sm:$0xff pattern:$0x75316420] }
  0x8c   :  { %447 = vrot.lane.b32.xlu1 %v437_v58, %s867_s27  ;;  %472 = vrot.lane.b32.xlu0 %v463_v60, %s868_s28  ;;  %599 = vst [vmem:[#allocation1 + $0x11] ss:$2 sm:$0xff] %v984_v31  ;;  %v1051_v31 = vpop.permute.xlu0 %82 }
  0x8d   :  { %445 = vrot.lane.b32.xlu2 %v436_v57, %s867_s27 }
  0x8f   :  { %v1044_v27 = vpop.permute.xlu2 %176 }
  0x90   :  { %v188_v28 = vsel %vm184_vm0, %v183_v18, %v1044_v27 }
  0x91   :  { %v196_v29 = vmul.f32 %v1624_v1, %v188_v28 }
  0x93   :  { %v555_v32 = vrot.slane %v196_v29, 4 }
  0x94   :  { %449 = vrot.lane.b32.xlu1 %v438_v59, %s867_s27  ;;  %501 = vrot.lane.b32.xlu0 %v491_v6, %s869_s9  ;;  %v1070_v37 = vpop.permute.xlu0 %146  ;;  %v1623_v6 = vperm.slane %v1064_v35, 0 }
  0x95   :  { %474 = vrot.lane.b32.xlu2 %v464_v61, %s868_s28  ;;  %v1057_v0 = vsel %vm620_vm1, %v543_v25, %v555_v32  ;;  %v1170_v32 = vld [vmem:[%s1610_s2] sm:$0xff] }
  0x96   :  { %1634 = vst [vmem:[#allocation2_spill] sm:$0xff] %v1057_v0  ;;  %v1059_v33 = vpop.permute.xlu1 %148 }
  0x97   :  { %v245_v34 = vpop.permute.xlu2 %244 }
  0x9c   :  { %503 = vrot.lane.b32.xlu0 %v492_v14, %s869_s9  ;;  %470 = vrot.lane.b32.xlu1 %v462_v63, %s868_s28 }
  0x9d   :  { %476 = vrot.lane.b32.xlu2 %v465_v62, %s868_s28 }
  0x9e   :  { %v1072_v38 = vpop.permute.xlu1 %180 }
  0x9f   :  { %v185_v39 = vsel %vm184_vm0, %v1072_v38, %v183_v18  ;;  %v241_v40 = vpop.permute.xlu2 %240 }
  0xa0   :  { %v195_v41 = vmul.f32 %v1627_v36, %v185_v39  ;;  %v1619_v39 = vperm.slane %v1035_v21, 0 }
  0xa2   :  { %v554_v42 = vrot.slane %v195_v41, 4 }
  0xa4   :  { %84 = vrot.lane.b32.xlu1 %v935_v8, %s864_s0  ;;  %497 = vrot.lane.b32.xlu0 %v489_v22, %s869_s9  ;;  %v1083_v43 = vsel %vm620_vm1, %v542_v24, %v554_v42 }
  0xa5   :  { %114 = vrot.lane.b32.xlu2 %v942_v11, %s871_s10 }
  0xa6   :  { %v215_v44 = vpop.permute.xlu1 %214  ;;  %v1087_v45 = vpop.permute.xlu0 %212 }
  0xa7   :  { %1635 = vst [vmem:[#allocation3_spill] sm:$0xff] %v1087_v45  ;;  %v279_v46 = vpop.permute.xlu2 %278  ;;  %v217_v51 = vsel %vm216_vm3, %v1087_v45, %v215_v44 }
  0xa8   :  { %v227_v60 = vmul.f32 %v1630_v50, %v217_v51 }
  0xac   :  { %150 = vrot.lane.b32.xlu1 %v954_v17, %s865_s25  ;;  %116 = vrot.lane.b32.xlu0 %v945_v12, %s871_s10  ;;  %v1629_v12 = vperm.slane %v1064_v35, 7  ;;  %v1625_v17 = vperm.slane %v1035_v21, 7 }
  0xad   :  { %499 = vrot.lane.b32.xlu2 %v490_v26, %s869_s9 }
  0xae   :  { %v1095_v8 = vpop.permute.xlu0 %208  ;;  %v243_v47 = vpop.permute.xlu1 %242 }
  0xaf   :  { %1636 = vst [vmem:[#allocation4_spill] sm:$0xff] %v1095_v8  ;;  %v1099_v11 = vsel %vm248_vm2, %v243_v47, %v245_v34  ;;  %v1103_v48 = vsel %vm248_vm2, %v241_v40, %v243_v47  ;;  %v275_v49 = vpop.permute.xlu2 %274 }
  0xb4   :  { %48 = vrot.lane.b32.xlu1 %v923_v3, %s870_s1  ;;  %210 = vrot.lane.b32.xlu0 %v964_v23, %s867_s27  ;;  %v1626_v3 = vperm.slane %v1035_v21, 6  ;;  %v220_v23 = vsel %vm216_vm3, %v215_v44, %v1095_v8  ;;  %v1190_v44 = vld [vmem:[%s1610_s2 + $0x28] ss:$0 sm:$0xff] }
  0xb5   :  { %178 = vrot.lane.b32.xlu2 %v958_v19, %s866_s26 }
  0xb6   :  { %v247_v52 = vpop.permute.xlu0 %246  ;;  %v277_v53 = vpop.permute.xlu1 %276  ;;  %v228_v61 = vmul.f32 %v1626_v3, %v220_v23 }
  0xb7   :  { %v249_v54 = vsel %vm248_vm2, %v245_v34, %v247_v52  ;;  %v252_v19 = vsel %vm248_vm2, %v247_v52, %v241_v40  ;;  %v281_v55 = vsel %vm280_vm4, %v277_v53, %v279_v46  ;;  %v282_v56 = vsel %vm280_vm4, %v275_v49, %v277_v53  ;;  %v313_v57 = vpop.permute.xlu2 %312  ;;  %v1175_v34 = vld [vmem:[%s1610_s2 + $0x8] sm:$0xff] }
  0xb8   :  { %v259_v58 = vmul.f32 %v1629_v12, %v249_v54  ;;  %v260_v59 = vmul.f32 %v1625_v17, %v252_v19  ;;  %v1617_v40 = vperm.slane %v1170_v32, 0  ;;  %v1616_v41 = vperm.slane %v1175_v34, 0 }
  0xb9   :  { %v290_v19 = vmul.f32 %v1190_v44, %v282_v56 }
  0xba   :  { %v566_v62 = vrot.slane %v259_v58, 4  ;;  %v567_v63 = vrot.slane %v260_v59, 4 }
  0xbc   :  { %118 = vrot.lane.b32.xlu1 %v947_v13, %s871_s10  ;;  %86 = vrot.lane.b32.xlu0 %v937_v9, %s864_s0  ;;  %v1146_v14 = vsel %vm620_vm1, %v227_v60, %v566_v62  ;;  %v1149_v16 = vsel %vm620_vm1, %v228_v61, %v567_v63  ;;  %v1156_v13 = vld [vmem:[%s1610_s2 + $0x30] ss:$0 sm:$0xff]  ;;  %v1219_v61 = vld.sshfl [vmem:[#allocation1] sm:$0xff pattern:$0x75316420] }
  0xbd   :  { %1637 = vst [vmem:[#allocation5_spill] sm:$0xff] %v1149_v16  ;;  %50 = vrot.lane.b32.xlu2 %v926_v4, %s870_s1  ;;  %v291_v28 = vmul.f32 %v1156_v13, %v281_v55  ;;  %v1221_v62 = vld.sshfl [vmem:[#allocation1 + $0x8] sm:$0xff pattern:$0x75316420] }
  0xbe   :  { %v273_v18 = vpop.permute.xlu0 %272  ;;  %v311_v9 = vpop.permute.xlu1 %310  ;;  %1638 = vst [vmem:[#allocation6_spill] sm:$0xff] %v1219_v61 }
  0xbf   :  { %v283_v22 = vsel %vm280_vm4, %v273_v18, %v275_v49  ;;  %v284_v24 = vsel %vm280_vm4, %v279_v46, %v273_v18  ;;  %v317_v25 = vsel %vm56_vm5, %v311_v9, %v313_v57  ;;  %v336_v26 = vpop.permute.xlu2 %335  ;;  %1639 = vst [vmem:[#allocation7_spill] sm:$0xff] %v1221_v62  ;;  %v1642_v62 = vperm.slane %v1175_v34, 3 }
  0xc0   :  { %v322_v4 = vmul.f32 %v317_v25, %v1623_v6  ;;  %597 = vst [vmem:[#allocation1 + $0x1] ss:$2 sm:$0xff] %v979_v30 }
  0xc2   :  { %v578_v29 = vrot.slane %v322_v4, 4 }
  0xc4   :  { %80 = vrot.lane.b32.xlu1 %v931_v7, %s864_s0  ;;  %52 = vrot.lane.b32.xlu0 %v928_v5, %s870_s1  ;;  %v1185_v42 = vsel %vm620_vm1, %v291_v28, %v578_v29  ;;  %v1195_v7 = vld [vmem:[%s1610_s2 + $0x20] ss:$0 sm:$0xff]  ;;  %v1202_v5 = vld [vmem:[%s1610_s2 + $0x38] ss:$0 sm:$0xff]  ;;  %v1618_v28 = vperm.slane %v1170_v32, 1 }
  0xc5   :  { %144 = vrot.lane.b32.xlu2 %v950_v15, %s865_s25  ;;  %v289_v55 = vmul.f32 %v1195_v7, %v283_v22  ;;  %v1622_v22 = vperm.slane %v1170_v32, 2 }
  0xc6   :  { %v315_v46 = vpop.permute.xlu0 %314  ;;  %v309_v47 = vpop.permute.xlu1 %308 }
  0xc7   :  { %v316_v49 = vsel %vm56_vm5, %v313_v57, %v315_v46  ;;  %v318_v51 = vsel %vm56_vm5, %v309_v47, %v311_v9  ;;  %v319_v23 = vsel %vm56_vm5, %v315_v46, %v309_v47  ;;  %v369_v52 = vpop.permute.xlu2 %368  ;;  %v292_v57 = vmul.f32 %v1202_v5, %v284_v24  ;;  %v601_v45 = vld.sshfl [vmem:[#allocation1 + $0x8] sm:$0xff pattern:$0x75316420] }
  0xc8   :  { %v323_v15 = vmul.f32 %v316_v49, %v1619_v39  ;;  %v320_v53 = vmul.f32 %v319_v23, %v1617_v40  ;;  %v321_v54 = vmul.f32 %v318_v51, %v1616_v41 }
  0xca   :  { %v579_v58 = vrot.slane %v323_v15, 4  ;;  %v576_v59 = vrot.slane %v320_v53, 4  ;;  %v577_v60 = vrot.slane %v321_v54, 4  ;;  %v1621_v54 = vperm.slane %v1035_v21, 2 }
  0xcc   :  { %46 = vrot.lane.b32.xlu0 %v921_v2, %s870_s1  ;;  %v1228_v56 = vsel %vm620_vm1, %v290_v19, %v577_v60  ;;  %v1231_v63 = vsel %vm620_vm1, %v289_v55, %v576_v59  ;;  %v1234_v18 = vsel %vm620_vm1, %v292_v57, %v579_v58  ;;  %v1620_v19 = vperm.slane %v1035_v21, 1 }
  0xcd   :  { %112 = vrot.lane.b32.xlu2 %v940_v10, %s871_s10 }
  0xce   :  { %v340_v9 = vpop.permute.xlu1 %339  ;;  %v338_v2 = vpop.permute.xlu0 %337 }
  0xcf   :  { %v1242_v30 = vsel %vm88_vm6, %v338_v2, %v340_v9  ;;  %v1246_v24 = vsel %vm88_vm6, %v336_v26, %v338_v2  ;;  %v363_v25 = vpop.permute.xlu2 %362 }
  0xd0   :  { %v373_v4 = vsel %vm120_vm7, %v369_v52, %v363_v25 }
  0xd1   :  { %v374_v10 = vmul.f32 %v373_v4, %v1622_v22 }
  0xd3   :  { %v588_v29 = vrot.slane %v374_v10, 4 }
  0xd6   :  { %v342_v46 = vpop.permute.xlu1 %341  ;;  %v365_v47 = vpop.permute.xlu0 %364 }
  0xd7   :  { %v343_v49 = vsel %vm88_vm6, %v340_v9, %v342_v46  ;;  %v346_v51 = vsel %vm88_vm6, %v342_v46, %v336_v26  ;;  %v392_v23 = vpop.permute.xlu2 %391 }
  0xd8   :  { %v347_v15 = vmul.f32 %v346_v51, %v1618_v28  ;;  %v350_v60 = vmul.f32 %v343_v49, %v1620_v19  ;;  %v1631_v28 = vperm.slane %v1175_v34, 2 }
  0xda   :  { %v1260_v53 = vsel %vm620_vm1, %v347_v15, %v588_v29 }
  0xde   :  { %v367_v55 = vpop.permute.xlu1 %366  ;;  %v1264_v57 = vpop.permute.xlu0 %393 }
  0xdf   :  { %v370_v58 = vsel %vm120_vm7, %v367_v55, %v369_v52  ;;  %v1268_v59 = vpop.permute.xlu2 %422  ;;  %v371_v50 = vsel %vm120_vm7, %v365_v47, %v367_v55  ;;  %v1641_v55 = vperm.slane %v1064_v35, 2 }
  0xe0   :  { %v377_v26 = vmul.f32 %v370_v58, %v1621_v54  ;;  %v372_v54 = vsel %vm120_vm7, %v363_v25, %v365_v47  ;;  %v1640_v25 = vperm.slane %v1175_v34, 7  ;;  %v398_v47 = vsel %vm152_vm8, %v392_v23, %v1264_v57 }
  0xe1   :  { %v375_v12 = vmul.f32 %v372_v54, %v1631_v28  ;;  %v376_v28 = vmul.f32 %v371_v50, %v1641_v55 }
  0xe2   :  { %v591_v9 = vrot.slane %v377_v26, 4 }
  0xe3   :  { %v589_v50 = vrot.slane %v375_v12, 4  ;;  %v221_v12 = vperm.slane %v1170_v32, 6 }
  0xe4   :  { %v1275_v2 = vsel %vm620_vm1, %v350_v60, %v591_v9  ;;  %v1628_v60 = vperm.slane %v1175_v34, 6 }
  0xe6   :  { %v421_v4 = vpop.permute.xlu1 %420  ;;  %v1277_v10 = vpop.permute.xlu0 %395 }
  0xe7   :  { %v446_v29 = vpop.permute.xlu2 %445 }
  0xee   :  { %v1279_v46 = vpop.permute.xlu0 %389  ;;  %v1281_v51 = vpop.permute.xlu1 %416 }
  0xef   :  { %v475_v52 = vpop.permute.xlu2 %474  ;;  %v399_v1 = vsel %vm152_vm8, %v1279_v46, %v392_v23 }
  0xf0   :  { %v402_v0 = vmul.f32 %v399_v1, %v1642_v62 }
  0xf6   :  { %v1283_v15 = vpop.permute.xlu1 %418  ;;  %v444_v41 = vpop.permute.xlu0 %443 }
  0xf7   :  { %v1285_v58 = vpop.permute.xlu2 %476  ;;  %v425_v36 = vsel %vm184_vm0, %v1283_v15, %v421_v4 }
  0xf8   :  { %v478_v1 = vsel %vm248_vm2, %v475_v52, %v1285_v58 }
  0xfe   :  { %v448_v40 = vpop.permute.xlu1 %447  ;;  %v1287_v49 = vpop.permute.xlu0 %472 }
  0xff   :  { %v1289_v26 = vpop.permute.xlu2 %114  ;;  %v452_v9 = vsel %vm216_vm3, %v446_v29, %v448_v40  ;;  %v479_v17 = vsel %vm248_vm2, %v1287_v49, %v475_v52  ;;  %v590_v52 = vrot.slane %v376_v28, 4 }
 0x100   :  { %v456_v22 = vmul.f32 %v452_v9, %v1628_v60  ;;  %v483_v9 = vmul.f32 %v479_v17, %v1640_v25  ;;  %v1644_v25 = vperm.slane %v1064_v35, 6 }
 0x102   :  { %v613_v61 = vrot.slane %v456_v22, 4  ;;  %v1643_v22 = vperm.slane %v1175_v34, 5 }
 0x104   :  { %v429_v16 = vmul.f32 %v425_v36, %v1643_v22 }
 0x106   :  { %v450_v39 = vpop.permute.xlu1 %449  ;;  %v502_v19 = vpop.permute.xlu0 %501 }
 0x107   :  { %v1299_v6 = vpop.permute.xlu2 %499 }
 0x108   :  { %v506_v3 = vsel %vm280_vm4, %v1299_v6, %v502_v19 }
 0x109   :  { %v510_v60 = vmul.f32 %v1190_v44, %v506_v3  ;;  %v451_v3 = vsel %vm216_vm3, %v448_v40, %v450_v39  ;;  %v159_v40 = vperm.slane %v1064_v35, 3 }
 0x10a   :  { %v457_v54 = vmul.f32 %v451_v3, %v1644_v25 }
 0x10b   :  { %v658_v44 = vrot.slane %v510_v60, 4  ;;  %v95_v60 = vperm.slane %v1064_v35, 1  ;;  %v403_v55 = vmul.f32 %v398_v47, %v159_v40  ;;  %v454_v47 = vsel %vm216_vm3, %v450_v39, %v444_v41 }
 0x10c   :  { %v614_v25 = vrot.slane %v457_v54, 4  ;;  %v157_v54 = vperm.slane %v1170_v32, 3 }
 0x10d   :  { %v666_v17 = vsel %vm620_vm1, %v483_v9, %v658_v44  ;;  %v650_v9 = vsel %vm620_vm1, %v429_v16, %v613_v61  ;;  %v1645_v44 = vperm.slane %v1175_v34, 1  ;;  %v453_v16 = vsel %vm216_vm3, %v444_v41, %v446_v29 }
 0x10e   :  { %701 = vmatpush.msra.mxu1 %v666_v17  ;;  %v504_v23 = vpop.permute.xlu0 %503  ;;  %v471_v8 = vpop.permute.xlu1 %470  ;;  %v646_v61 = vsel %vm620_vm1, %v402_v0, %v601_v45  ;;  %v349_v0 = vmul.f32 %v1242_v30, %v95_v60  ;;  %v1647_v45 = vperm.slane %v1064_v35, 5  ;;  %v160_v29 = vperm.slane %v1035_v21, 3 }
 0x10f   :  { %v505_v36 = vsel %vm280_vm4, %v502_v19, %v504_v23  ;;  %v1347_v62 = vpop.permute.xlu2 %178  ;;  %v348_v3 = vmul.f32 %v1246_v24, %v1645_v44  ;;  %v424_v19 = vsel %vm184_vm0, %v421_v4, %v1268_v59  ;;  %v1646_v24 = vperm.slane %v1064_v35, 7 }
 0x110   :  { %v511_v22 = vmul.f32 %v1156_v13, %v505_v36  ;;  %702 = vmatpush.msra.mxu1 %v650_v9  ;;  %v253_v13 = vperm.slane %v1170_v32, 7  ;;  %v602_v36 = vld.sshfl [vmem:[#allocation1 + $0x10] sm:$0xff pattern:$0x75316420]  ;;  %v154_v4 = vsel %vm152_vm8, %v1070_v37, %v1059_v33  ;;  %v430_v39 = vmul.f32 %v424_v19, %v1647_v45 }
 0x111   :  { %v484_v17 = vmul.f32 %v478_v1, %v1646_v24  ;;  %v642_v28 = vsel %vm620_vm1, %v348_v3, %v589_v50  ;;  %v455_v50 = vmul.f32 %v453_v16, %v221_v12  ;;  %v1648_v1 = vperm.slane %v1035_v21, 6 }
 0x112   :  { %v659_v44 = vrot.slane %v511_v22, 4  ;;  %703 = vmatpush.msra.mxu1 %v646_v61  ;;  %v189_v3 = vperm.slane %v1170_v32, 5  ;;  %v651_v19 = vsel %vm620_vm1, %v430_v39, %v614_v25  ;;  %v647_v61 = vsel %vm620_vm1, %v403_v55, %v602_v36 }
 0x113   :  { %v458_v9 = vmul.f32 %v454_v47, %v1648_v1  ;;  %v643_v24 = vsel %vm620_vm1, %v349_v0, %v590_v52  ;;  %v480_v16 = vsel %vm248_vm2, %v471_v8, %v1287_v49  ;;  %v397_v55 = vsel %vm152_vm8, %v1264_v57, %v1277_v10 }
 0x114   :  { %704 = vmatpush.msra.mxu1 %v642_v28  ;;  %v667_v41 = vsel %vm620_vm1, %v484_v17, %v659_v44  ;;  %v481_v17 = vsel %vm248_vm2, %v1285_v58, %v471_v8  ;;  %v400_v8 = vsel %vm152_vm8, %v1277_v10, %v1279_v46  ;;  %v612_v57 = vrot.slane %v455_v50, 4 }
 0x115   :  { %721 = vmatpush.msra.mxu2 %v667_v41  ;;  %v615_v52 = vrot.slane %v458_v9, 4  ;;  %v482_v10 = vmul.f32 %v480_v16, %v253_v13  ;;  %v163_v28 = vmul.f32 %v159_v40, %v154_v4  ;;  %v404_v39 = vmul.f32 %v397_v55, %v160_v29  ;;  %v600_v41 = vld.sshfl [vmem:[#allocation1] sm:$0xff pattern:$0x75316420] }
 0x116   :  { %705 = vmatpush.msra.mxu1 %v1228_v56  ;;  %v1387_v30 = vpop.permute.xlu1 %84  ;;  %v498_v22 = vpop.permute.xlu0 %497  ;;  %v186_v40 = vsel %vm184_vm0, %v1347_v62, %v1072_v38  ;;  %v1651_v16 = vperm.slane %v1064_v35, 2 }
 0x117   :  { %v1398_v47 = vpop.permute.xlu2 %50  ;;  %v507_v56 = vsel %vm280_vm4, %v498_v22, %v1299_v6  ;;  %v508_v25 = vsel %vm280_vm4, %v504_v23, %v498_v22  ;;  %722 = vmatpush.msra.mxu2 %v651_v19  ;;  %v427_v6 = vsel %vm184_vm0, %v1268_v59, %v1281_v51  ;;  %v426_v23 = vsel %vm184_vm0, %v1281_v51, %v1283_v15  ;;  %v603_v22 = vld.sshfl [vmem:[#allocation1 + $0x18] sm:$0xff pattern:$0x75316420] }
 0x118   :  { %v509_v58 = vmul.f32 %v1195_v7, %v507_v56  ;;  %v512_v49 = vmul.f32 %v1202_v5, %v508_v25  ;;  %v1649_v7 = vperm.slane %v1035_v21, 7  ;;  %v401_v59 = vmul.f32 %v400_v8, %v157_v54 }
 0x119   :  { %723 = vmatpush.msra.mxu2 %v647_v61  ;;  %v1650_v51 = vperm.slane %v1035_v21, 5  ;;  %v428_v36 = vmul.f32 %v426_v23, %v189_v3  ;;  %v90_v19 = vsel %vm88_vm6, %v1051_v31, %v1387_v30  ;;  %v1652_v56 = vperm.slane %v1175_v34, 7 }
 0x11a   :  { %v485_v46 = vmul.f32 %v481_v17, %v1649_v7  ;;  %v657_v5 = vrot.slane %v509_v58, 4  ;;  %v660_v44 = vrot.slane %v512_v49, 4  ;;  %v1653_v8 = vperm.slane %v1175_v34, 5  ;;  %v1656_v7 = vld [vmem:[#allocation4_spill] sm:$0xff] }
 0x11b   :  { %724 = vmatpush.msra.mxu2 %v643_v24  ;;  %v431_v15 = vmul.f32 %v427_v6, %v1650_v51  ;;  %v649_v1 = vsel %vm620_vm1, %v428_v36, %v612_v57  ;;  %v531_v24 = vrot.slane %v163_v28, 4  ;;  %v258_v25 = vmul.f32 %v1652_v56, %v1099_v11 }
 0x11c   :  { %v665_v0 = vsel %vm620_vm1, %v482_v10, %v657_v5  ;;  %v668_v45 = vsel %vm620_vm1, %v485_v46, %v660_v44  ;;  %v194_v58 = vmul.f32 %v1653_v8, %v186_v40  ;;  %v99_v49 = vmul.f32 %v95_v60, %v90_v19  ;;  %v1655_v10 = vld [vmem:[#allocation3_spill] sm:$0xff] }
 0x11d   :  { %681 = vmatpush.msra.mxu0 %v665_v0  ;;  %725 = vmatpush.msra.mxu2 %v1185_v42  ;;  %v652_v9 = vsel %vm620_vm1, %v431_v15, %v615_v52  ;;  %v187_v42 = vsel %vm184_vm0, %v1044_v27, %v1347_v62  ;;  %v645_v27 = vsel %vm620_vm1, %v401_v59, %v600_v41  ;;  %v1657_v46 = vperm.slane %v1064_v35, 0  ;;  %v1659_v15 = vld [vmem:[#allocation5_spill] sm:$0xff]  ;;  %v1662_v40 = vld [vmem:[#allocation7_spill] sm:$0xff] }
 0x11e   :  { %741 = vmatpush.msra.mxu3 %v668_v45  ;;  %v151_v4 = vpop.permute.xlu1 %150  ;;  %v1442_v50 = vpop.permute.xlu0 %116  ;;  %v257_v62 = vmul.f32 %v253_v13, %v1103_v48  ;;  %v193_v55 = vmul.f32 %v189_v3, %v187_v42  ;;  %v565_v48 = vrot.slane %v258_v25, 4  ;;  %v553_v3 = vrot.slane %v194_v58, 4  ;;  %v1663_v42 = vld [vmem:[#allocation6_spill] sm:$0xff] }
 0x11f   :  { %v145_v38 = vpop.permute.xlu2 %144  ;;  %v122_v61 = vsel %vm120_vm7, %v1289_v26, %v1442_v50  ;;  %682 = vmatpush.msra.mxu0 %v649_v1  ;;  %726 = vmatpush.msra.mxu2 %v1146_v14  ;;  %v648_v14 = vsel %vm620_vm1, %v404_v39, %v603_v22  ;;  %v519_v23 = vrot.slane %v99_v49, 4  ;;  %v1658_v59 = vperm.slane %v1175_v34, 6  ;;  %v1661_v39 = vld [vmem:[#allocation2_spill] sm:$0xff] }
 0x120   :  { %v131_v17 = vmul.f32 %v1651_v16, %v122_v61  ;;  %742 = vmatpush.msra.mxu3 %v652_v9  ;;  %v155_v11 = vsel %vm152_vm8, %v145_v38, %v1070_v37  ;;  %v552_v13 = vrot.slane %v193_v55, 4  ;;  %v153_v36 = vsel %vm152_vm8, %v1059_v33, %v151_v4  ;;  %v669_v33 = vld [vmem:[%s1612_s3] sm:$0xf] }
 0x121   :  { %683 = vmatpush.msra.mxu0 %v645_v27  ;;  %727 = vmatpush.msra.mxu2 %v1083_v43  ;;  %v564_v43 = vrot.slane %v257_v62, 4  ;;  %v156_v35 = vsel %vm152_vm8, %v151_v4, %v145_v38  ;;  %v1660_v0 = vperm.slane %v1175_v34, 2  ;;  %v630_v1 = vsel %vm620_vm1, %v1662_v40, %v553_v3 }
 0x122   :  { %743 = vmatpush.msra.mxu3 %v648_v14  ;;  %v627_v6 = vsel %vm620_vm1, %v131_v17, %v531_v24  ;;  %v164_v4 = vmul.f32 %v160_v29, %v153_v36  ;;  %v161_v9 = vmul.f32 %v157_v54, %v156_v35  ;;  %v629_v19 = vsel %vm620_vm1, %v1663_v42, %v552_v13 }
 0x123   :  { %684 = vmatpush.msra.mxu0 %v1260_v53  ;;  %728 = vmatpush.msra.mxu2 %v627_v6  ;;  %v1654_v53 = vperm.slane %v1175_v34, 3  ;;  %v1664_v27 = vperm.slane %v1170_v32, 2  ;;  %v1665_v56 = vperm.slane %v1035_v21, 2  ;;  %v1666_v8 = vperm.slane %v1035_v21, 1 }
 0x124   :  { %744 = vmatpush.msra.mxu3 %v1275_v2  ;;  %v532_v16 = vrot.slane %v164_v4, 4  ;;  %v529_v17 = vrot.slane %v161_v9, 4  ;;  %v872_v42 = vmov 512.0  }
 0x125   :  { %685 = vmatpush.msra.mxu0 %v1231_v63  ;;  %v162_v52 = vmul.f32 %v1654_v53, %v155_v11  ;;  %860 = vrcp.f32 %v872_v42 }
 0x126   :  { %745 = vmatpush.msra.mxu3 %v1234_v18  ;;  %v1482_v60 = vpop.permute.xlu1 %48  ;;  %v211_v57 = vpop.permute.xlu0 %210 }
 0x127   :  { %v58_v37 = vsel %vm56_vm5, %v1482_v60, %v1398_v47  ;;  %v113_v2 = vpop.permute.xlu2 %112  ;;  %v218_v63 = vsel %vm216_vm3, %v211_v57, %v1655_v10  ;;  %v219_v18 = vsel %vm216_vm3, %v1656_v7, %v211_v57  ;;  %v530_v22 = vrot.slane %v162_v52, 4 }
 0x128   :  { %v67_v5 = vmul.f32 %v1657_v46, %v58_v37  ;;  %v123_v44 = vsel %vm120_vm7, %v113_v2, %v1289_v26  ;;  %v225_v28 = vmul.f32 %v221_v12, %v219_v18  ;;  %v226_v51 = vmul.f32 %v1658_v59, %v218_v63  ;;  %746 = vmatpush.msra.mxu3 %v1659_v15 }
 0x129   :  { %v130_v45 = vmul.f32 %v1660_v0, %v123_v44  ;;  %v1668_v57 = vperm.slane %v1170_v32, 1  ;;  %v1669_v52 = vperm.slane %v1175_v34, 1  ;;  %v1670_v63 = vperm.slane %v1170_v32, 0 }
 0x12a   :  { %747 = vmatpush.msra.mxu3 %v1661_v39  ;;  %v633_v26 = vsel %vm620_vm1, %v225_v28, %v564_v43  ;;  %v634_v12 = vsel %vm620_vm1, %v226_v51, %v565_v48  ;;  %v623_v41 = vsel %vm620_vm1, %v67_v5, %v519_v23  ;;  %v1667_v48 = vperm.slane %v1035_v21, 0 }
 0x12b   :  { %686 = vmatpush.msra.mxu0 %v633_v26  ;;  %706 = vmatpush.msra.mxu1 %v634_v12  ;;  %v626_v24 = vsel %vm620_vm1, %v130_v45, %v530_v22  ;;  %v1671_v18 = vperm.slane %v1175_v34, 0 }
 0x12c   :  { %729 = vmatpush.msra.mxu2 %v623_v41 }
 0x12d   :  { %687 = vmatpush.msra.mxu0 %v629_v19  ;;  %707 = vmatpush.msra.mxu1 %v630_v1  ;;  %v861_v19 = vpop.eup %860 }
 0x12e   :  { %v119_v38 = vpop.permute.xlu1 %118  ;;  %v87_v61 = vpop.permute.xlu0 %86  ;;  %843 = vmatmul.msk.f32.vlgmr.msra.gmra.mxu2 %vm670_vm9, %v669_v33  ;;  %vm783_vm10 = vweird.f32 %v861_v19 }
 0x12f   :  { %v121_v29 = vsel %vm120_vm7, %v1442_v50, %v119_v38  ;;  %v124_v54 = vsel %vm120_vm7, %v119_v38, %v113_v2  ;;  %708 = vmatpush.msra.mxu1 %v626_v24  ;;  %v89_v14 = vsel %vm88_vm6, %v1387_v30, %v87_v61  ;;  %v779_v38 = vmul.f32 512.0, %v861_v19 }
 0x130   :  { %v129_v62 = vmul.f32 %v1664_v27, %v124_v54  ;;  %v132_v25 = vmul.f32 %v1665_v56, %v121_v29  ;;  %v100_v58 = vmul.f32 %v1666_v8, %v89_v14  ;;  %v873_v29 = vmov 0  }
 0x131   :  { %855 = vset.pattern.permute.xlu0 %v873_v29 }
 0x132   :  { %v625_v55 = vsel %vm620_vm1, %v129_v62, %v529_v17  ;;  %v628_v50 = vsel %vm620_vm1, %v132_v25, %v532_v16  ;;  %v520_v43 = vrot.slane %v100_v58, 4 }
 0x133   :  { %688 = vmatpush.msra.mxu0 %v625_v55  ;;  %748 = vmatpush.msra.mxu3 %v628_v50 }
 0x136   :  { %v81_v49 = vpop.permute.xlu1 %80  ;;  %v53_v6 = vpop.permute.xlu0 %52 }
 0x137   :  { %v57_v11 = vsel %vm56_vm5, %v1398_v47, %v53_v6  ;;  %v91_v30 = vsel %vm88_vm6, %v81_v49, %v1051_v31  ;;  %v92_v3 = vsel %vm88_vm6, %v87_v61, %v81_v49  ;;  %v780_v61 = vsub.f32 1.0, %v779_v38 }
 0x138   :  { %v68_v13 = vmul.f32 %v1667_v48, %v57_v11  ;;  %v97_v53 = vmul.f32 %v1668_v57, %v92_v3  ;;  %v98_v47 = vmul.f32 %v1669_v52, %v91_v30  ;;  %v754_v11 = vld [vmem:[%s1613_s4] sm:$0xf] }
 0x139   :  { %v781_v24 = vmul.f32 %v861_v19, %v780_v61  ;;  %v755_v3 = vld [vmem:[%s1614_s5] sm:$0xf] }
 0x13a   :  { %v624_v23 = vsel %vm620_vm1, %v68_v13, %v520_v43  ;;  %v517_v2 = vrot.slane %v97_v53, 4  ;;  %v518_v10 = vrot.slane %v98_v47, 4 }
 0x13b   :  { %749 = vmatpush.msra.mxu3 %v624_v23  ;;  %v782_v54 = vadd.f32 %v861_v19, %v781_v24 }
 0x13c   :  { %844 = vmatmul.msk.f32.vlgmr.msra.gmra.mxu3 %vm670_vm9, %v669_v33 }
 0x13d   :  { %v784_v16 = vsel %vm783_vm10, %v861_v19, %v782_v54 }
 0x13e   :  { %v47_v21 = vpop.permute.xlu0 %46 }
 0x13f   :  { %v59_v37 = vsel %vm56_vm5, %v47_v21, %v1482_v60  ;;  %v60_v31 = vsel %vm56_vm5, %v53_v6, %v47_v21 }
 0x140   :  { %v65_v7 = vmul.f32 %v1670_v63, %v60_v31  ;;  %v66_v46 = vmul.f32 %v1671_v18, %v59_v37 }
 0x142   :  { %v621_v5 = vsel %vm620_vm1, %v65_v7, %v517_v2  ;;  %v622_v44 = vsel %vm620_vm1, %v66_v46, %v518_v10 }
 0x143   :  { %689 = vmatpush.msra.mxu0 %v621_v5  ;;  %709 = vmatpush.msra.mxu1 %v622_v44 }
 0x144   :  { %841 = vmatmul.msk.f32.vlgmr.msra.gmra.mxu0 %vm670_vm9, %v669_v33  ;;  %842 = vmatmul.msk.f32.vlgmr.msra.gmra.mxu1 %vm670_vm9, %v669_v33 }
 0x1b1   :  { %v1575_v20 = vpop.f32.mrf.mxu2 }
 0x1b2   :  { %v767_v32 = vmul.f32 %v1575_v20, %v1575_v20  ;;  %v759_v59 = vsel %vm620_vm1, %v1575_v20, 0.0 }
 0x1b4   :  { %v772_v12 = vsel %vm620_vm1, %v767_v32, 0.0 }
 0x1bf   :  { %v1577_v60 = vpop.f32.mrf.mxu3 }
 0x1c0   :  { %v768_v51 = vmul.f32 %v1577_v60, %v1577_v60  ;;  %v761_v41 = vsel %vm620_vm1, %v1577_v60, 0.0 }
 0x1c1   :  { %v691_v28 = vpop.f32.mrf.mxu0  ;;  %v711_v34 = vpop.f32.mrf.mxu1 }
 0x1c2   :  { %v756_v15 = vsel %vm620_vm1, %v691_v28, 0.0  ;;  %v765_v36 = vmul.f32 %v691_v28, %v691_v28  ;;  %v757_v35 = vsel %vm620_vm1, %v711_v34, 0.0  ;;  %v766_v0 = vmul.f32 %v711_v34, %v711_v34 }
 0x1c3   :  { %v758_v45 = vadd.f32 %v757_v35, %v756_v15  ;;  %v774_v33 = vsel %vm620_vm1, %v768_v51, 0.0 }
 0x1c4   :  { %v769_v39 = vsel %vm620_vm1, %v765_v36, 0.0  ;;  %v770_v26 = vsel %vm620_vm1, %v766_v0, 0.0 }
 0x1c5   :  { %v771_v40 = vadd.f32 %v770_v26, %v769_v39  ;;  %v760_v1 = vadd.f32 %v759_v59, %v758_v45 }
 0x1c7   :  { %v762_v4 = vadd.f32 %v761_v41, %v760_v1  ;;  %v773_v9 = vadd.f32 %v772_v12, %v771_v40 }
 0x1c9   :  { %763 = vadd.xlane.f32.xlu1 %v762_v4  ;;  %v775_v22 = vadd.f32 %v774_v33, %v773_v9 }
 0x1cb   :  { %776 = vadd.xlane.f32.xlu2 %v775_v22 }
 0x23c   :  { %v764_v17 = vpop.xlane.xlu1 %763 }
 0x23d   :  { %v785_v27 = vmul.f32 %v784_v16, %v764_v17 }
 0x23e   :  { %v777_v62 = vpop.xlane.xlu2 %776 }
 0x23f   :  { %v787_v56 = vmul.f32 %v785_v27, %v785_v27  ;;  %v786_v25 = vmul.f32 %v784_v16, %v777_v62 }
 0x241   :  { %v788_v14 = vsub.f32 %v786_v25, %v787_v56 }
 0x243   :  { %v789_v55 = vadd.f32 1e-05, %v788_v14 }
 0x245   :  { %862 = vrsqrt.f32 %v789_v55  ;;  %vm796_vm12 = vweird.f32 %v789_v55 }
 0x24b   :  { %v863_v50 = vpop.eup %862 }
 0x24c   :  { %v791_v8 = vmul.f32 %v863_v50, %v789_v55  ;;  %vm797_vm11 = vweird.f32 %v863_v50 }
 0x24d   :  { %vm798_vm13 = vmor %vm796_vm12, %vm797_vm11 }
 0x24e   :  { %v792_v58 = vmul.f32 %v863_v50, %v791_v8 }
 0x250   :  { %v793_v49 = vmul.f32 0.5, %v792_v58 }
 0x252   :  { %v794_v6 = vsub.f32 1.5, %v793_v49 }
 0x254   :  { %v795_v43 = vmul.f32 %v863_v50, %v794_v6 }
 0x256   :  { %v799_v48 = vsel %vm798_vm13, %v863_v50, %v795_v43 }
 0x257   :  { %v800_v13 = vmul.f32 %v799_v48, %v754_v11 }
 0x259   :  { %805 = vperm.xlu0 %855, %v800_v13   ;;  %v801_v30 = vmul.f32 %v800_v13, %v785_v27 }
 0x25b   :  { %v802_v23 = vsub.f32 %v755_v3, %v801_v30 }
 0x261   :  { %814 = vperm.xlu0 %855, %v802_v23  }
 0x2cb   :  { %v806_v57 = vpop.permute.xlu0 %805 }
 0x2cc   :  { %v808_v53 = vmul.f32 %v806_v57, %v691_v28  ;;  %v809_v52 = vmul.f32 %v806_v57, %v711_v34  ;;  %v810_v47 = vmul.f32 %v806_v57, %v1575_v20  ;;  %v811_v21 = vmul.f32 %v806_v57, %v1577_v60 }
 0x2d3   :  { %v815_v37 = vpop.permute.xlu0 %814 }
 0x2d4   :  { %v817_v31 = vadd.f32 %v815_v37, %v808_v53  ;;  %v818_v2 = vadd.f32 %v815_v37, %v809_v52  ;;  %v819_v10 = vadd.f32 %v815_v37, %v810_v47  ;;  %v820_v63 = vadd.f32 %v815_v37, %v811_v21 }
 0x2d6   :  { %v822_v7 = vmax.f32 %v818_v2, 0.0  ;;  %v824_v18 = vmax.f32 %v820_v63, 0.0  ;;  %v821_v46 = vmax.f32 %v817_v31, 0.0  ;;  %v823_v5 = vmax.f32 %v819_v10, 0.0 }
 0x2d8   :  { %v829_v44 = vrot.slane %v822_v7, 4  ;;  %v830_v32 = vrot.slane %v824_v18, 4 }
 0x2da   :  { %v831_v59 = vsel %vm620_vm1, %v821_v46, %v829_v44  ;;  %v832_v28 = vsel %vm620_vm1, %v823_v5, %v830_v32 }
 0x2db   :  { %835 = vst [vmem:[%s1615_s6] sm:$0xff] %v831_v59 }
 0x2dc   :  { %836 = vst [vmem:[%s1615_s6 + $0x8] sm:$0xff] %v832_v28 }

// kernel: decoder_block_forward.5
= control target key start
LH: loop header
LB: loop body
LE: loop exit
PB: predicated region body
PF: predicated region fallthrough
CT: control target
= control target key end

     0   :  { %s578_s22 = smov 17   ;;  %s580_s23 = smov 15   ;;  %v51_v51 = vlaneseq  ;;  %vm349_vm7 = vcmask 1043456   ;;  %vm367_vm9 = vcmask 293888   ;;  %s959_s0 = inlined_call_operand.vmem [shape: f32[4,512], index: 0, kind: input, shape index: {}]   ;;  %s960_s1 = inlined_call_operand.vmem [shape: f32[9,512], index: 1, kind: input, shape index: {}]   ;;  %s961_s2 = inlined_call_operand.vmem [shape: f32[4,36], index: 2, kind: input, shape index: {}]   ;;  %s962_s3 = inlined_call_operand.vmem [shape: f32[4,1], index: 3, kind: input, shape index: {}]   ;;  %s963_s4 = inlined_call_operand.vmem [shape: f32[4,1], index: 4, kind: input, shape index: {}]   ;;  %s964_s5 = inlined_call_operand.vmem [shape: f32[4,512], index: 5, kind: output, shape index: {}]  }
   0x1   :  { %v621_v0 = vld [vmem:[%s959_s0] sm:$0xff]  ;;  %v626_v1 = vld [vmem:[%s959_s0 + $0x8] sm:$0xff]  ;;  %s579_s0 = smov 16   ;;  %s581_s24 = smov 1   ;;  %v703_v55 = vld [vmem:[%s960_s1 + $0x10] sm:$0xff] }
   0x2   :  { %32 = vst [vmem:[#allocation1] ss:$2 sm:$0xff] %v621_v0  ;;  %s582_s25 = smov 127   ;;  %s583_s26 = smov 113   ;;  %v698_v54 = vand.u32 127, %v51_v51  ;;  %v710_v57 = vld [vmem:[%s960_s1 + $0x18] sm:$0xff] }
   0x3   :  { %34 = vst [vmem:[#allocation1 + $0x10] ss:$2 sm:$0xff] %v626_v1  ;;  %s584_s27 = smov 112   ;;  %s585_s28 = smov 111   ;;  %v60_v58 = vperm.slane %v703_v55, 0  ;;  %v157_v60 = vperm.slane %v710_v57, 3 }
   0x4   :  { %vm53_vm0 = vcmp.lt.s32.totalorder %v698_v54, 17  ;;  %vm85_vm1 = vcmp.lt.s32.totalorder %v698_v54, 16  ;;  %vm149_vm2 = vcmp.lt.s32.totalorder %v698_v54, 1  ;;  %v92_v61 = vperm.slane %v703_v55, 1 }
   0x5   :  { %vm181_vm3 = vcmp.lt.s32.totalorder %v698_v54, 127  ;;  %vm117_vm4 = vcmp.lt.s32.totalorder %v698_v54, 15  ;;  %vm245_vm5 = vcmp.lt.s32.totalorder %v698_v54, 112  ;;  %vm213_vm6 = vcmp.lt.s32.totalorder %v698_v54, 113 }
   0x6   :  { %vm277_vm8 = vcmp.lt.s32.totalorder %v698_v54, 111 }
   0x9   :  { %v36_v2 = vld.sshfl [vmem:[#allocation1 + $0x8] sm:$0xff pattern:$0x75316420]  ;;  %v630_v3 = vld.sshfl [vmem:[#allocation1] sm:$0xff pattern:$0x75316420] }
   0xa   :  { %45 = vrot.lane.b32.xlu2 %v36_v2, %s578_s22  ;;  %66 = vst [vmem:[#allocation1] ss:$2 sm:$0xff] %v621_v0  ;;  %v37_v4 = vld.sshfl [vmem:[#allocation1 + $0x10] sm:$0xff pattern:$0x75316420]  ;;  %v734_v2 = vld [vmem:[%s960_s1] sm:$0xff] }
   0xb   :  { %v634_v5 = vld.sshfl [vmem:[#allocation1 + $0x18] sm:$0xff pattern:$0x75316420]  ;;  %47 = vrot.lane.b32.xlu0 %v37_v4, %s578_s22 }
   0xc   :  { %68 = vst [vmem:[#allocation1 + $0x10] ss:$2 sm:$0xff] %v626_v1 }
  0x11   :  { %v70_v6 = vld.sshfl [vmem:[#allocation1 + $0x8] sm:$0xff pattern:$0x75316420]  ;;  %v638_v7 = vld.sshfl [vmem:[#allocation1] sm:$0xff pattern:$0x75316420] }
  0x12   :  { %79 = vrot.lane.b32.xlu1 %v70_v6, %s579_s0  ;;  %98 = vst [vmem:[#allocation1] ss:$2 sm:$0xff] %v621_v0  ;;  %v156_v6 = vperm.slane %v703_v55, 3 }
  0x13   :  { %v71_v8 = vld.sshfl [vmem:[#allocation1 + $0x10] sm:$0xff pattern:$0x75316420]  ;;  %v72_v9 = vld.sshfl [vmem:[#allocation1 + $0x18] sm:$0xff pattern:$0x75316420] }
  0x14   :  { %100 = vst [vmem:[#allocation1 + $0x10] ss:$2 sm:$0xff] %v626_v1  ;;  %81 = vrot.lane.b32.xlu2 %v71_v8, %s579_s0 }
  0x19   :  { %v102_v10 = vld.sshfl [vmem:[#allocation1 + $0x8] sm:$0xff pattern:$0x75316420]  ;;  %v644_v11 = vld.sshfl [vmem:[#allocation1] sm:$0xff pattern:$0x75316420] }
  0x1a   :  { %111 = vrot.lane.b32.xlu0 %v102_v10, %s580_s23  ;;  %130 = vst [vmem:[#allocation1] ss:$2 sm:$0xff] %v621_v0 }
  0x1b   :  { %v103_v12 = vld.sshfl [vmem:[#allocation1 + $0x10] sm:$0xff pattern:$0x75316420]  ;;  %v104_v13 = vld.sshfl [vmem:[#allocation1 + $0x18] sm:$0xff pattern:$0x75316420] }
  0x1c   :  { %132 = vst [vmem:[#allocation1 + $0x10] ss:$2 sm:$0xff] %v626_v1  ;;  %113 = vrot.lane.b32.xlu1 %v103_v12, %s580_s23 }
  0x21   :  { %v134_v14 = vld.sshfl [vmem:[#allocation1 + $0x8] sm:$0xff pattern:$0x75316420]  ;;  %v133_v15 = vld.sshfl [vmem:[#allocation1] sm:$0xff pattern:$0x75316420] }
  0x22   :  { %162 = vst [vmem:[#allocation1] ss:$2 sm:$0xff] %v621_v0 }
  0x23   :  { %v135_v16 = vld.sshfl [vmem:[#allocation1 + $0x10] sm:$0xff pattern:$0x75316420]  ;;  %v136_v17 = vld.sshfl [vmem:[#allocation1 + $0x18] sm:$0xff pattern:$0x75316420] }
  0x24   :  { %145 = vrot.lane.b32.xlu2 %v135_v16, %s581_s24  ;;  %143 = vrot.lane.b32.xlu1 %v134_v14, %s581_s24  ;;  %164 = vst [vmem:[#allocation1 + $0x10] ss:$2 sm:$0xff] %v626_v1  ;;  %v220_v16 = vperm.slane %v703_v55, 6 }
  0x29   :  { %v165_v18 = vld.sshfl [vmem:[#allocation1] sm:$0xff pattern:$0x75316420]  ;;  %v166_v19 = vld.sshfl [vmem:[#allocation1 + $0x8] sm:$0xff pattern:$0x75316420] }
  0x2a   :  { %173 = vrot.lane.b32.xlu0 %v165_v18, %s582_s25  ;;  %194 = vst [vmem:[#allocation1] ss:$2 sm:$0xff] %v621_v0 }
  0x2b   :  { %v168_v20 = vld.sshfl [vmem:[#allocation1 + $0x18] sm:$0xff pattern:$0x75316420]  ;;  %v167_v21 = vld.sshfl [vmem:[#allocation1 + $0x10] sm:$0xff pattern:$0x75316420] }
  0x2c   :  { %147 = vrot.lane.b32.xlu2 %v136_v17, %s581_s24  ;;  %196 = vst [vmem:[#allocation1 + $0x10] ss:$2 sm:$0xff] %v626_v1  ;;  %v221_v17 = vperm.slane %v710_v57, 6 }
  0x31   :  { %v197_v22 = vld.sshfl [vmem:[#allocation1] sm:$0xff pattern:$0x75316420]  ;;  %v198_v23 = vld.sshfl [vmem:[#allocation1 + $0x8] sm:$0xff pattern:$0x75316420] }
  0x32   :  { %175 = vrot.lane.b32.xlu0 %v166_v19, %s582_s25  ;;  %226 = vst [vmem:[#allocation1] ss:$2 sm:$0xff] %v621_v0 }
  0x33   :  { %v200_v24 = vld.sshfl [vmem:[#allocation1 + $0x18] sm:$0xff pattern:$0x75316420]  ;;  %v199_v25 = vld.sshfl [vmem:[#allocation1 + $0x10] sm:$0xff pattern:$0x75316420] }
  0x34   :  { %177 = vrot.lane.b32.xlu2 %v167_v21, %s582_s25  ;;  %211 = vrot.lane.b32.xlu1 %v200_v24, %s583_s26  ;;  %228 = vst [vmem:[#allocation1 + $0x10] ss:$2 sm:$0xff] %v626_v1  ;;  %v125_v24 = vperm.slane %v710_v57, 2 }
  0x39   :  { %v229_v26 = vld.sshfl [vmem:[#allocation1] sm:$0xff pattern:$0x75316420]  ;;  %v230_v27 = vld.sshfl [vmem:[#allocation1 + $0x8] sm:$0xff pattern:$0x75316420] }
  0x3a   :  { %209 = vrot.lane.b32.xlu0 %v199_v25, %s583_s26  ;;  %258 = vst [vmem:[#allocation1] ss:$2 sm:$0xff] %v621_v0 }
  0x3b   :  { %v231_v28 = vld.sshfl [vmem:[#allocation1 + $0x10] sm:$0xff pattern:$0x75316420]  ;;  %v232_v29 = vld.sshfl [vmem:[#allocation1 + $0x18] sm:$0xff pattern:$0x75316420] }
  0x3c   :  { %179 = vrot.lane.b32.xlu2 %v168_v20, %s582_s25  ;;  %205 = vrot.lane.b32.xlu1 %v197_v22, %s583_s26  ;;  %260 = vst [vmem:[#allocation1 + $0x10] ss:$2 sm:$0xff] %v626_v1 }
  0x41   :  { %v261_v30 = vld.sshfl [vmem:[#allocation1] sm:$0xff pattern:$0x75316420]  ;;  %v262_v31 = vld.sshfl [vmem:[#allocation1 + $0x8] sm:$0xff pattern:$0x75316420] }
  0x42   :  { %241 = vrot.lane.b32.xlu0 %v231_v28, %s584_s27  ;;  %314 = vst [vmem:[#allocation1] ss:$2 sm:$0xff] %v621_v0 }
  0x43   :  { %v263_v32 = vld.sshfl [vmem:[#allocation1 + $0x10] sm:$0xff pattern:$0x75316420]  ;;  %v264_v33 = vld.sshfl [vmem:[#allocation1 + $0x18] sm:$0xff pattern:$0x75316420] }
  0x44   :  { %207 = vrot.lane.b32.xlu1 %v198_v23, %s583_s26  ;;  %237 = vrot.lane.b32.xlu2 %v229_v26, %s584_s27  ;;  %316 = vst [vmem:[#allocation1 + $0x10] ss:$2 sm:$0xff] %v626_v1  ;;  %v188_v1 = vperm.slane %v703_v55, 5  ;;  %v252_v26 = vperm.slane %v703_v55, 7 }
  0x4a   :  { %243 = vrot.lane.b32.xlu0 %v232_v29, %s584_s27 }
  0x4c   :  { %83 = vrot.lane.b32.xlu1 %v72_v9, %s579_s0  ;;  %239 = vrot.lane.b32.xlu2 %v230_v27, %s584_s27 }
  0x52   :  { %269 = vrot.lane.b32.xlu0 %v261_v30, %s585_s28 }
  0x54   :  { %273 = vrot.lane.b32.xlu1 %v263_v32, %s585_s28  ;;  %115 = vrot.lane.b32.xlu2 %v104_v13, %s580_s23  ;;  %v186_v13 = vperm.slane %v734_v2, 5 }
  0x5a   :  { %271 = vrot.lane.b32.xlu0 %v262_v31, %s585_s28  ;;  %v253_v31 = vperm.slane %v710_v57, 7 }
  0x5c   :  { %275 = vrot.lane.b32.xlu1 %v264_v33, %s585_s28  ;;  %77 = vrot.lane.b32.xlu2 %v638_v7, %s579_s0  ;;  %v189_v7 = vperm.slane %v710_v57, 5 }
  0x62   :  { %141 = vrot.lane.b32.xlu0 %v133_v15, %s581_s24  ;;  %v250_v15 = vperm.slane %v734_v2, 7 }
  0x64   :  { %49 = vrot.lane.b32.xlu1 %v634_v5, %s578_s22  ;;  %v674_v34 = vpop.permute.xlu2 %45  ;;  %v124_v5 = vperm.slane %v703_v55, 2 }
  0x6a   :  { %109 = vrot.lane.b32.xlu0 %v644_v11, %s580_s23 }
  0x6c   :  { %43 = vrot.lane.b32.xlu1 %v630_v3, %s578_s22  ;;  %v739_v3 = vld [vmem:[%s960_s1 + $0x8] sm:$0xff] }
  0x6d   :  { %v187_v14 = vperm.slane %v739_v3, 5  ;;  %v251_v25 = vperm.slane %v739_v3, 7  ;;  %v91_v55 = vperm.slane %v739_v3, 1 }
  0x6e   :  { %v676_v35 = vpop.permute.xlu2 %81 }
  0x7d   :  { %v678_v36 = vpop.permute.xlu0 %47 }
  0x7e   :  { %v146_v38 = vpop.permute.xlu2 %145  ;;  %v55_v62 = vsel %vm53_vm0, %v674_v34, %v678_v36 }
  0x7f   :  { %v745_v8 = vmul.f32 %v60_v58, %v55_v62  ;;  %v93_v62 = vperm.slane %v710_v57, 1 }
  0x84   :  { %v680_v37 = vpop.permute.xlu1 %79 }
  0x85   :  { %v87_v0 = vsel %vm85_vm1, %v680_v37, %v676_v35 }
  0x86   :  { %v686_v41 = vpop.permute.xlu2 %147  ;;  %v755_v12 = vmul.f32 %v92_v61, %v87_v0 }
  0x87   :  { %v150_v63 = vsel %vm149_vm2, %v146_v38, %v686_v41 }
  0x88   :  { %v753_v11 = vmul.f32 %v157_v60, %v150_v63 }
  0x8c   :  { %v682_v39 = vpop.permute.xlu0 %111 }
  0x8e   :  { %v684_v40 = vpop.permute.xlu1 %113  ;;  %v178_v44 = vpop.permute.xlu2 %177 }
  0x8f   :  { %v775_v23 = vsel %vm117_vm4, %v682_v39, %v684_v40 }
  0x96   :  { %v688_v43 = vpop.permute.xlu1 %143  ;;  %v180_v47 = vpop.permute.xlu2 %179 }
  0x97   :  { %v182_v9 = vsel %vm181_vm3, %v178_v44, %v180_v47  ;;  %v151_v10 = vsel %vm149_vm2, %v688_v43, %v146_v38 }
  0x98   :  { %v763_v19 = vmul.f32 %v188_v1, %v182_v9  ;;  %v765_v20 = vmul.f32 %v156_v6, %v151_v10 }
  0x9c   :  { %v174_v42 = vpop.permute.xlu0 %173 }
  0x9d   :  { %v185_v28 = vsel %vm181_vm3, %v180_v47, %v174_v42  ;;  %v308_v47 = vrot.slane %v765_v20, 4 }
  0x9e   :  { %v238_v52 = vpop.permute.xlu2 %237  ;;  %v797_v58 = vmul.f32 %v189_v7, %v185_v28 }
  0xa4   :  { %v176_v45 = vpop.permute.xlu0 %175 }
  0xa5   :  { %v184_v21 = vsel %vm181_vm3, %v174_v42, %v176_v45  ;;  %v183_v29 = vsel %vm181_vm3, %v176_v45, %v178_v44  ;;  %v331_v42 = vrot.slane %v763_v19, 4  ;;  %v218_v44 = vperm.slane %v734_v2, 6 }
  0xa6   :  { %v690_v46 = vpop.permute.xlu1 %211  ;;  %v240_v4 = vpop.permute.xlu2 %239  ;;  %v787_v32 = vmul.f32 %v186_v13, %v184_v21  ;;  %v219_v45 = vperm.slane %v739_v3, 6  ;;  %v572_v13 = vld [vmem:[%s960_s1 + $0x30] ss:$0 sm:$0xff] }
  0xa7   :  { %v248_v22 = vsel %vm245_vm5, %v238_v52, %v240_v4 }
  0xa8   :  { %v254_v33 = vmul.f32 %v250_v15, %v248_v22 }
  0xaa   :  { %v341_v6 = vrot.slane %v254_v33, 4 }
  0xac   :  { %v692_v48 = vpop.permute.xlu0 %209 }
  0xad   :  { %v214_v7 = vsel %vm213_vm6, %v692_v48, %v690_v46 }
  0xae   :  { %v694_v49 = vpop.permute.xlu1 %205  ;;  %v799_v60 = vpop.permute.xlu2 %115 }
  0xaf   :  { %v217_v9 = vsel %vm213_vm6, %v690_v46, %v694_v49  ;;  %v118_v15 = vsel %vm117_vm4, %v684_v40, %v799_v60 }
  0xb4   :  { %v242_v50 = vpop.permute.xlu0 %241 }
  0xb5   :  { %v247_v30 = vsel %vm245_vm5, %v240_v4, %v242_v50  ;;  %v329_v4 = vrot.slane %v787_v32, 4 }
  0xb6   :  { %v696_v53 = vpop.permute.xlu1 %207  ;;  %v255_v61 = vmul.f32 %v251_v25, %v247_v30 }
  0xb7   :  { %v216_v63 = vsel %vm213_vm6, %v694_v49, %v696_v53  ;;  %v215_v21 = vsel %vm213_vm6, %v696_v53, %v692_v48 }
  0xb8   :  { %v342_v22 = vrot.slane %v255_v61, 4  ;;  %v222_v25 = vmul.f32 %v218_v44, %v216_v63  ;;  %v223_v53 = vmul.f32 %v219_v45, %v215_v21  ;;  %v317_v44 = vld.sshfl [vmem:[#allocation1] sm:$0xff pattern:$0x75316420]  ;;  %v332_v61 = vrot.slane %v797_v58, 4 }
  0xb9   :  { %v318_v45 = vld.sshfl [vmem:[#allocation1 + $0x8] sm:$0xff pattern:$0x75316420]  ;;  %v319_v63 = vld.sshfl [vmem:[#allocation1 + $0x10] sm:$0xff pattern:$0x75316420] }
  0xba   :  { %v362_v58 = vsel %vm349_vm7, %v222_v25, %v341_v6  ;;  %v61_v6 = vperm.slane %v710_v57, 0  ;;  %v90_v57 = vperm.slane %v734_v2, 1 }
  0xbc   :  { %v244_v56 = vpop.permute.xlu0 %243 }
  0xbd   :  { %v246_v38 = vsel %vm245_vm5, %v242_v50, %v244_v56  ;;  %v249_v51 = vsel %vm245_vm5, %v244_v56, %v238_v52  ;;  %v570_v50 = vld [vmem:[%s960_s1 + $0x20] ss:$0 sm:$0xff]  ;;  %v571_v52 = vld [vmem:[%s960_s1 + $0x28] ss:$0 sm:$0xff]  ;;  %v191_v56 = vmul.f32 %v187_v14, %v183_v29  ;;  %v573_v14 = vld [vmem:[%s960_s1 + $0x38] ss:$0 sm:$0xff] }
  0xbe   :  { %v713_v59 = vpop.permute.xlu1 %83  ;;  %v256_v0 = vmul.f32 %v252_v26, %v246_v38  ;;  %v257_v1 = vmul.f32 %v253_v31, %v249_v51  ;;  %v320_v51 = vld.sshfl [vmem:[#allocation1 + $0x18] sm:$0xff pattern:$0x75316420] }
  0xbf   :  { %v330_v48 = vrot.slane %v191_v56, 4  ;;  %v129_v56 = vmul.f32 %v125_v24, %v118_v15  ;;  %v78_v24 = vpop.permute.xlu2 %77 }
  0xc0   :  { %v343_v30 = vrot.slane %v256_v0, 4  ;;  %v344_v31 = vrot.slane %v257_v1, 4  ;;  %v128_v0 = vmul.f32 %v124_v5, %v775_v23  ;;  %v360_v5 = vsel %vm349_vm7, %v319_v63, %v331_v42 }
  0xc1   :  { %v361_v23 = vsel %vm349_vm7, %v320_v51, %v332_v61  ;;  %v88_v42 = vsel %vm85_vm1, %v78_v24, %v680_v37  ;;  %v89_v15 = vsel %vm85_vm1, %v713_v59, %v78_v24 }
  0xc2   :  { %v95_v25 = vmul.f32 %v91_v55, %v88_v42 }
  0xc4   :  { %v270_v18 = vpop.permute.xlu0 %269 }
  0xc6   :  { %v274_v27 = vpop.permute.xlu1 %273 }
  0xcc   :  { %v272_v10 = vpop.permute.xlu0 %271 }
  0xcd   :  { %v279_v46 = vsel %vm277_vm8, %v272_v10, %v274_v27  ;;  %v280_v49 = vsel %vm277_vm8, %v270_v18, %v272_v10  ;;  %v154_v10 = vperm.slane %v734_v2, 3 }
  0xce   :  { %v276_v26 = vpop.permute.xlu1 %275  ;;  %v286_v28 = vmul.f32 %v570_v50, %v280_v49  ;;  %v287_v29 = vmul.f32 %v571_v52, %v279_v46  ;;  %v224_v50 = vmul.f32 %v220_v16, %v214_v7  ;;  %v296_v52 = vrot.slane %v755_v12, 4 }
  0xcf   :  { %v278_v40 = vsel %vm277_vm8, %v274_v27, %v276_v26  ;;  %v281_v32 = vsel %vm277_vm8, %v276_v26, %v270_v18  ;;  %v225_v27 = vmul.f32 %v221_v17, %v217_v9  ;;  %v86_v18 = vsel %vm85_vm1, %v676_v35, %v713_v59 }
  0xd0   :  { %550 = vmatpush.msk.msra.mxu0 %vm349_vm7, %v286_v28  ;;  %552 = vmatpush.msk.msra.mxu1 %vm349_vm7, %v287_v29  ;;  %v288_v33 = vmul.f32 %v572_v13, %v278_v40  ;;  %v289_v38 = vmul.f32 %v573_v14, %v281_v32  ;;  %v363_v16 = vsel %vm349_vm7, %v223_v53, %v342_v22  ;;  %v309_v17 = vrot.slane %v753_v11, 4 }
  0xd1   :  { %v364_v35 = vsel %vm349_vm7, %v224_v50, %v343_v30  ;;  %v365_v12 = vsel %vm349_vm7, %v225_v27, %v344_v31  ;;  %v97_v1 = vmul.f32 %v93_v62, %v86_v18  ;;  %v358_v9 = vsel %vm349_vm7, %v317_v44, %v329_v4 }
  0xd2   :  { %554 = vmatpush.msk.msra.mxu2 %vm349_vm7, %v288_v33  ;;  %556 = vmatpush.msk.msra.mxu3 %vm349_vm7, %v289_v38  ;;  %v359_v11 = vsel %vm349_vm7, %v318_v45, %v330_v48  ;;  %v356_v62 = vsel %vm349_vm7, %v128_v0, %v308_v47  ;;  %v155_v13 = vperm.slane %v739_v3, 3  ;;  %v357_v19 = vsel %vm349_vm7, %v129_v56, %v309_v17 }
  0xd3   :  { %395 = vmatpush.msra.mxu0 %v362_v58  ;;  %415 = vmatpush.msra.mxu1 %v363_v16  ;;  %v297_v21 = vrot.slane %v97_v1, 4  ;;  %v352_v37 = vsel %vm349_vm7, %v745_v8, %v296_v52  ;;  %v123_v59 = vperm.slane %v739_v3, 2  ;;  %v94_v26 = vmul.f32 %v90_v57, %v89_v15 }
  0xd4   :  { %435 = vmatpush.msra.mxu2 %v364_v35  ;;  %455 = vmatpush.msra.mxu3 %v365_v12  ;;  %v142_v7 = vpop.permute.xlu0 %141  ;;  %v58_v28 = vperm.slane %v734_v2, 0  ;;  %v59_v29 = vperm.slane %v739_v3, 0  ;;  %v295_v38 = vrot.slane %v95_v25, 4  ;;  %v463_v25 = vld [vmem:[%s962_s3] sm:$0xf] }
  0xd5   :  { %396 = vmatpush.msra.mxu0 %v358_v9  ;;  %416 = vmatpush.msra.mxu1 %v359_v11  ;;  %v152_v47 = vsel %vm149_vm2, %v142_v7, %v688_v43  ;;  %v153_v14 = vsel %vm149_vm2, %v686_v41, %v142_v7  ;;  %v122_v43 = vperm.slane %v734_v2, 2  ;;  %v294_v2 = vrot.slane %v94_v26, 4 }
  0xd6   :  { %436 = vmatpush.msra.mxu2 %v360_v5  ;;  %v50_v4 = vpop.permute.xlu1 %49  ;;  %456 = vmatpush.msra.mxu3 %v361_v23  ;;  %v158_v49 = vmul.f32 %v154_v10, %v153_v14  ;;  %v159_v41 = vmul.f32 %v155_v13, %v152_v47 }
  0xd7   :  { %v54_v20 = vsel %vm53_vm0, %v678_v36, %v50_v4  ;;  %v366_v36 = vld [vmem:[%s961_s2] sm:$0xf] }
  0xd8   :  { %v65_v46 = vmul.f32 %v61_v6, %v54_v20  ;;  %437 = vmatpush.msra.mxu2 %v356_v62  ;;  %457 = vmatpush.msra.mxu3 %v357_v19  ;;  %v306_v40 = vrot.slane %v158_v49, 4  ;;  %v307_v32 = vrot.slane %v159_v41, 4  ;;  %v586_v62 = vmov 512.0  }
  0xd9   :  { %574 = vrcp.f32 %v586_v62  ;;  %v587_v19 = vmov 0  }
  0xda   :  { %438 = vmatpush.msra.mxu2 %v352_v37  ;;  %v353_v22 = vsel %vm349_vm7, %v65_v46, %v297_v21  ;;  %568 = vset.pattern.permute.xlu1 %v587_v19 }
  0xdb   :  { %458 = vmatpush.msra.mxu3 %v353_v22  ;;  %555 = vmatmul.msk.f32.vlgmr.msra.gmra.mxu2 %vm367_vm9, %v366_v36 }
  0xdc   :  { %v110_v30 = vpop.permute.xlu0 %109  ;;  %557 = vmatmul.msk.f32.vlgmr.msra.gmra.mxu3 %vm367_vm9, %v366_v36  ;;  %569 = vset.pattern.permute.xlu0 %v587_v19 }
  0xdd   :  { %v120_v8 = vsel %vm117_vm4, %v110_v30, %v682_v39  ;;  %v121_v31 = vsel %vm117_vm4, %v799_v60, %v110_v30 }
  0xde   :  { %v44_v48 = vpop.permute.xlu1 %43  ;;  %v126_v53 = vmul.f32 %v122_v43, %v121_v31  ;;  %v127_v33 = vmul.f32 %v123_v59, %v120_v8  ;;  %v464_v8 = vld [vmem:[%s963_s4] sm:$0xf] }
  0xdf   :  { %v56_v3 = vsel %vm53_vm0, %v44_v48, %v674_v34  ;;  %v57_v51 = vsel %vm53_vm0, %v50_v4, %v44_v48  ;;  %v575_v57 = vpop.eup %574 }
  0xe0   :  { %v62_v44 = vmul.f32 %v58_v28, %v57_v51  ;;  %v63_v39 = vmul.f32 %v59_v29, %v56_v3  ;;  %v354_v61 = vsel %vm349_vm7, %v126_v53, %v306_v40  ;;  %v355_v60 = vsel %vm349_vm7, %v127_v33, %v307_v32 }
  0xe1   :  { %397 = vmatpush.msra.mxu0 %v354_v61  ;;  %417 = vmatpush.msra.mxu1 %v355_v60  ;;  %v488_v4 = vmul.f32 512.0, %v575_v57  ;;  %vm492_vm10 = vweird.f32 %v575_v57 }
  0xe2   :  { %v350_v50 = vsel %vm349_vm7, %v62_v44, %v294_v2  ;;  %v351_v27 = vsel %vm349_vm7, %v63_v39, %v295_v38 }
  0xe3   :  { %398 = vmatpush.msra.mxu0 %v350_v50  ;;  %418 = vmatpush.msra.mxu1 %v351_v27  ;;  %v489_v10 = vsub.f32 1.0, %v488_v4 }
  0xe4   :  { %551 = vmatmul.msk.f32.vlgmr.msra.gmra.mxu0 %vm367_vm9, %v366_v36  ;;  %553 = vmatmul.msk.f32.vlgmr.msra.gmra.mxu1 %vm367_vm9, %v366_v36 }
  0xe5   :  { %v490_v13 = vmul.f32 %v575_v57, %v489_v10 }
  0xe7   :  { %v491_v42 = vadd.f32 %v575_v57, %v490_v13 }
  0xe9   :  { %v493_v20 = vsel %vm492_vm10, %v575_v57, %v491_v42 }
 0x15e   :  { %v925_v34 = vpop.f32.mrf.mxu2 }
 0x15f   :  { %v927_v54 = vpop.f32.mrf.mxu3  ;;  %v476_v18 = vmul.f32 %v925_v34, %v925_v34  ;;  %v468_v56 = vsel %vm349_vm7, %v925_v34, 0.0 }
 0x160   :  { %v477_v58 = vmul.f32 %v927_v54, %v927_v54  ;;  %v470_v6 = vsel %vm349_vm7, %v927_v54, 0.0 }
 0x161   :  { %v400_v45 = vpop.f32.mrf.mxu0  ;;  %v420_v52 = vpop.f32.mrf.mxu1  ;;  %v481_v1 = vsel %vm349_vm7, %v476_v18, 0.0 }
 0x162   :  { %v465_v16 = vsel %vm349_vm7, %v400_v45, 0.0  ;;  %v474_v63 = vmul.f32 %v400_v45, %v400_v45  ;;  %v466_v17 = vsel %vm349_vm7, %v420_v52, 0.0  ;;  %v475_v0 = vmul.f32 %v420_v52, %v420_v52 }
 0x163   :  { %v467_v35 = vadd.f32 %v466_v17, %v465_v16  ;;  %v483_v11 = vsel %vm349_vm7, %v477_v58, 0.0 }
 0x164   :  { %v478_v12 = vsel %vm349_vm7, %v474_v63, 0.0  ;;  %v479_v24 = vsel %vm349_vm7, %v475_v0, 0.0 }
 0x165   :  { %v480_v7 = vadd.f32 %v479_v24, %v478_v12  ;;  %v469_v9 = vadd.f32 %v468_v56, %v467_v35 }
 0x167   :  { %v471_v55 = vadd.f32 %v470_v6, %v469_v9  ;;  %v482_v5 = vadd.f32 %v481_v1, %v480_v7 }
 0x169   :  { %472 = vadd.xlane.f32.xlu2 %v471_v55  ;;  %v484_v23 = vadd.f32 %v483_v11, %v482_v5 }
 0x16b   :  { %485 = vadd.xlane.f32.xlu0 %v484_v23 }
 0x1dc   :  { %v473_v47 = vpop.xlane.xlu2 %472 }
 0x1dd   :  { %v494_v14 = vmul.f32 %v493_v20, %v473_v47 }
 0x1de   :  { %v486_v15 = vpop.xlane.xlu0 %485 }
 0x1df   :  { %v496_v21 = vmul.f32 %v494_v14, %v494_v14  ;;  %v495_v46 = vmul.f32 %v493_v20, %v486_v15 }
 0x1e1   :  { %v497_v36 = vsub.f32 %v495_v46, %v496_v21 }
 0x1e3   :  { %v498_v37 = vadd.f32 1e-05, %v497_v36 }
 0x1e5   :  { %576 = vrsqrt.f32 %v498_v37  ;;  %vm505_vm12 = vweird.f32 %v498_v37 }
 0x1eb   :  { %v577_v43 = vpop.eup %576 }
 0x1ec   :  { %v500_v49 = vmul.f32 %v577_v43, %v498_v37  ;;  %vm506_vm11 = vweird.f32 %v577_v43 }
 0x1ed   :  { %vm507_vm13 = vmor %vm505_vm12, %vm506_vm11 }
 0x1ee   :  { %v501_v41 = vmul.f32 %v577_v43, %v500_v49 }
 0x1f0   :  { %v502_v22 = vmul.f32 0.5, %v501_v41 }
 0x1f2   :  { %v503_v59 = vsub.f32 1.5, %v502_v22 }
 0x1f4   :  { %v504_v26 = vmul.f32 %v577_v43, %v503_v59 }
 0x1f6   :  { %v508_v28 = vsel %vm507_vm13, %v577_v43, %v504_v26 }
 0x1f7   :  { %v509_v29 = vmul.f32 %v508_v28, %v463_v25 }
 0x1f9   :  { %514 = vperm.xlu1 %568, %v509_v29   ;;  %v510_v30 = vmul.f32 %v509_v29, %v494_v14 }
 0x1fb   :  { %v511_v31 = vsub.f32 %v464_v8, %v510_v30 }
 0x201   :  { %523 = vperm.xlu1 %568, %v511_v31  }
 0x26b   :  { %v515_v40 = vpop.permute.xlu1 %514 }
 0x26c   :  { %v517_v32 = vmul.f32 %v515_v40, %v400_v45  ;;  %v518_v48 = vmul.f32 %v515_v40, %v420_v52  ;;  %v519_v53 = vmul.f32 %v515_v40, %v925_v34  ;;  %v520_v33 = vmul.f32 %v515_v40, %v927_v54 }
 0x273   :  { %v524_v38 = vpop.permute.xlu1 %523 }
 0x274   :  { %v526_v2 = vadd.f32 %v524_v38, %v517_v32  ;;  %v527_v3 = vadd.f32 %v524_v38, %v518_v48  ;;  %v528_v51 = vadd.f32 %v524_v38, %v519_v53  ;;  %v529_v44 = vadd.f32 %v524_v38, %v520_v33 }
 0x276   :  { %v531_v39 = vmax.f32 %v527_v3, 0.0  ;;  %v533_v61 = vmax.f32 %v529_v44, 0.0  ;;  %v530_v60 = vmax.f32 %v526_v2, 0.0  ;;  %v532_v50 = vmax.f32 %v528_v51, 0.0 }
 0x278   :  { %v538_v27 = vrot.slane %v531_v39, 4  ;;  %v539_v18 = vrot.slane %v533_v61, 4 }
 0x27a   :  { %v540_v56 = vsel %vm349_vm7, %v530_v60, %v538_v27  ;;  %v541_v45 = vsel %vm349_vm7, %v532_v50, %v539_v18 }
 0x27b   :  { %544 = vst [vmem:[%s964_s5] sm:$0xff] %v540_v56 }
 0x27c   :  { %545 = vst [vmem:[%s964_s5 + $0x8] sm:$0xff] %v541_v45 }

</bundles_post_ra>
